<compile_context>
chip_gen: v7x
topology: tpu7x:2x2x1
jax: 0.10.0
libtpu: 0.0.40
codegen_flags: <defaults>
</compile_context>

<pallas_src>
import numpy as np
import jax
import jax.numpy as jnp
from jax import lax
from jax.experimental import pallas as pl
from jax.experimental.pallas import tpu as pltpu


def _round_up(v, m):
    return (v + m - 1) // m * m


# ----------------------------- conv kernel --------------------------------- #

def make_conv_kernel(num_edges):
    """One Custom_GCN / Custom_GCN2 layer (message + add-aggregate + ReLU).

    Grid: 1-D over edge tiles. Node arrays / weights are whole-array VMEM blocks,
    edge indices are tiled. Scatter-add accumulates into an f32 VMEM scratch.
    """

    def conv_kernel(src_ref, tgt_ref, tgt_row_ref, h_ref, pos_ref,
                    pw1, pb1, pw2i, pw2j,        # pixel_embedding (2nd layer folded
                                                 #   with message-MLP row blocks)
                    dw1, db1, dw2m,              # dist_embedding (2nd layer folded)
                    bfold,                       # all folded biases of msg hidden
                    mw2, mb2,                    # message MLP 2nd layer
                    out_ref, z_sc, acc_sc):
        k = pl.program_id(0)
        n_k = pl.num_programs(0)
        te = src_ref.shape[0]
        n_nodes = h_ref.shape[0]
        d_msg = pw2i.shape[1]

        # ---- once per layer: node-level embeddings + accumulator init ----
        @pl.when(k == 0)
        def _init():
            h = h_ref[...]
            if pw1.shape[0] == 1:
                # K=1 contraction -> VPU broadcast multiply (no MXU pass)
                ph = jax.nn.relu(h * pw1[...] + pb1[...])
            else:
                ph = jax.nn.relu(jnp.dot(h, pw1[...],
                                         preferred_element_type=jnp.float32)
                                 + pb1[...])
            # per-node contributions of pe(x_i) / pe(x_j) to the message hidden layer
            u_i = jnp.dot(ph, pw2i[...], preferred_element_type=jnp.float32)
            u_j = jnp.dot(ph, pw2j[...], preferred_element_type=jnp.float32)
            # pack [pos | u_i | u_j] so one gather per orientation fetches everything
            # an edge needs; stored bf16 for bf16 MXU gathers.
            z_sc[...] = jnp.concatenate([pos_ref[...], u_i, u_j],
                                        axis=-1).astype(jnp.bfloat16)
            acc_sc[...] = jnp.zeros_like(acc_sc)

        # -------------------------- per edge-tile ------------------------------
        src_c = src_ref[...]            # [TE, 1] int32 (edge-major layout)
        tgt_c = tgt_ref[...]            # [TE, 1] int32
        tgt_r = tgt_row_ref[...]        # [1, TE] int32 (node-major layout)

        # edge-major one-hots for gathers (plain [TE,N]@[N,F] matmuls, no transpose);
        # node-major one-hot only for the scatter-add.
        lane_nodes = lax.broadcasted_iota(jnp.int32, (te, n_nodes), 1)
        a_gi = (lane_nodes == tgt_c).astype(jnp.bfloat16)     # gather node i data
        a_gj = (lane_nodes == src_c).astype(jnp.bfloat16)     # gather node j data
        sub_nodes = lax.broadcasted_iota(jnp.int32, (n_nodes, te), 0)
        a_scat = (sub_nodes == tgt_r).astype(jnp.bfloat16)    # [N, TE] scatter-add

        z = z_sc[...]                                          # [N, 2 + 2*d_msg] bf16
        gi = jnp.dot(a_gi, z, preferred_element_type=jnp.float32)  # [TE, 2+2*d_msg]
        gj = jnp.dot(a_gj, z, preferred_element_type=jnp.float32)

        # per-edge euclidean distance (pos sits in lanes 0:2 of the packed gather)
        dp = gi[:, 0:2] - gj[:, 0:2]
        dist = jnp.sqrt(dp[:, 0:1] * dp[:, 0:1] + dp[:, 1:2] * dp[:, 1:2])

        # dist_embedding first layer: K=1 -> VPU broadcast multiply
        de_h = jax.nn.relu(dist * dw1[...] + db1[...])

        # message-MLP hidden: gathered pe contributions + folded dist matmul + biases
        msg_h = (gi[:, 2:2 + d_msg]
                 + gj[:, 2 + d_msg:2 + 2 * d_msg]
                 + jnp.dot(de_h, dw2m[...], preferred_element_type=jnp.float32)
                 + bfold[...])
        msg = jnp.dot(jax.nn.relu(msg_h), mw2[...],
                      preferred_element_type=jnp.float32) + mb2[...]

        # zero messages of padded edges
        valid = (k * te + lax.broadcasted_iota(jnp.int32, (te, 1), 0)) < num_edges
        msg = jnp.where(valid, msg, 0.0)

        # aggr='add' scatter via node-major one-hot (bf16 MXU, f32 accumulation)
        acc_sc[...] += jnp.dot(a_scat, msg.astype(jnp.bfloat16),
                               preferred_element_type=jnp.float32)

        @pl.when(k == n_k - 1)
        def _finalize():
            out_ref[...] = jax.nn.relu(acc_sc[...])

    return conv_kernel


# ----------------------- global_add_pool + readout -------------------------- #

def pool_readout_kernel(batch_ref, h_ref,
                        r_w1, bn_g, bn_b, bn_m, bn_v, r_w2, r_b2, out_ref):
    h = h_ref[...]                      # [N_pad, 16] f32
    batch = batch_ref[...]              # [1, N_pad] int32 (padding rows -> num_graphs)
    n_graphs = out_ref.shape[0]
    n_nodes = h.shape[0]

    pool = (lax.broadcasted_iota(jnp.int32, (n_graphs, n_nodes), 0)
            == batch).astype(jnp.bfloat16)
    g = jnp.dot(pool, h.astype(jnp.bfloat16),
                preferred_element_type=jnp.float32)            # [B, 16]

    # readout MLP: Linear(no bias) -> BatchNorm1d (eval) -> ReLU -> Linear(bias)
    r = jnp.dot(g, r_w1[...], preferred_element_type=jnp.float32)
    r = (r - bn_m[...]) * lax.rsqrt(bn_v[...] + 1e-5) * bn_g[...] + bn_b[...]
    r = jax.nn.relu(r)
    out_ref[...] = jnp.dot(r, r_w2[...],
                           preferred_element_type=jnp.float32) + r_b2[...]


# ------------------------------ wrapper ------------------------------------ #

def _fold_conv_params(pw1, pb1, pw2, pb2, dw1, db1, dw2, db2,
                      mw1, mb1, mw2, mb2, d_pe):
    """Compose the message-MLP first layer with the embedding 2nd layers (once per
    forward; tiny <=16x16 matmuls). Exact in f32."""
    w_i = mw1[:d_pe]                 # multiplies pe(x_i)
    w_j = mw1[d_pe:2 * d_pe]         # multiplies pe(x_j)
    w_d = mw1[2 * d_pe:]             # multiplies dist_embedding
    pw2i = pw2 @ w_i
    pw2j = pw2 @ w_j
    dw2m = dw2 @ w_d
    b_fold = mb1 + pb2 @ w_i + pb2 @ w_j + db2 @ w_d
    return [pw1, pb1, pw2i, pw2j, dw1, db1, dw2m, b_fold, mw2, mb2]


def _conv_layer(src_col, tgt_col, tgt_row, h, pos, cp, d_out, num_edges, edge_tile):
    n_pad = h.shape[0]
    e_pad = src_col.shape[0]
    grid = (e_pad // edge_tile,)

    def full(a):
        return pl.BlockSpec(a.shape, lambda k: (0, 0))

    in_specs = ([pl.BlockSpec((edge_tile, 1), lambda k: (k, 0)),    # src (edge-major)
                 pl.BlockSpec((edge_tile, 1), lambda k: (k, 0)),    # tgt (edge-major)
                 pl.BlockSpec((1, edge_tile), lambda k: (0, k)),    # tgt (node-major)
                 full(h), full(pos)]
                + [full(p) for p in cp])

    return pl.pallas_call(
        make_conv_kernel(num_edges),
        out_shape=jax.ShapeDtypeStruct((n_pad, d_out), jnp.float32),
        grid=grid,
        in_specs=in_specs,
        out_specs=pl.BlockSpec((n_pad, d_out), lambda k: (0, 0)),
        scratch_shapes=[pltpu.VMEM((n_pad, 2 + 2 * d_out), jnp.bfloat16),  # [pos|u_i|u_j]
                        pltpu.VMEM((n_pad, d_out), jnp.float32)],          # scatter accum
        compiler_params=pltpu.CompilerParams(
            dimension_semantics=("arbitrary",),     # edge axis accumulates into scratch
            vmem_limit_bytes=32 * 1024 * 1024),
    )(src_col, tgt_col, tgt_row, h, pos, *cp)


def gcn_encoder_forward(x, pos, edge_index, batch, params, num_graphs, edge_tile=128):
    """x:[N,1] f32, pos:[N,2] f32, edge_index:[2,E] int, batch:[N] int."""
    p = list(params)
    n = x.shape[0]
    e = edge_index.shape[1]
    n_pad = _round_up(n, 8)
    e_pad = _round_up(e, edge_tile)

    # node padding (padding nodes get batch id == num_graphs -> never pooled)
    x_p = jnp.zeros((n_pad, 1), jnp.float32).at[:n].set(x.astype(jnp.float32))
    pos_p = jnp.zeros((n_pad, 2), jnp.float32).at[:n].set(pos.astype(jnp.float32))
    batch_p = jnp.full((1, n_pad), num_graphs, jnp.int32).at[0, :n].set(
        batch.astype(jnp.int32))

    # edge padding (padded edges point at node 0; their messages are masked to zero)
    src = edge_index[0].astype(jnp.int32)
    tgt = edge_index[1].astype(jnp.int32)
    src_col = jnp.zeros((e_pad, 1), jnp.int32).at[:e, 0].set(src)
    tgt_col = jnp.zeros((e_pad, 1), jnp.int32).at[:e, 0].set(tgt)
    tgt_row = jnp.zeros((1, e_pad), jnp.int32).at[0, :e].set(tgt)

    conv1_params = _fold_conv_params(*p[0:12], d_pe=4)
    conv2_params = _fold_conv_params(*p[12:24], d_pe=8)

    h1 = _conv_layer(src_col, tgt_col, tgt_row, x_p, pos_p, conv1_params,
                     d_out=8, num_edges=e, edge_tile=edge_tile)
    h2 = _conv_layer(src_col, tgt_col, tgt_row, h1, pos_p, conv2_params,
                     d_out=16, num_edges=e, edge_tile=edge_tile)

    readout_ins = [batch_p, h2, p[24], p[25], p[26], p[27], p[28], p[29], p[30]]
    return pl.pallas_call(
        pool_readout_kernel,
        out_shape=jax.ShapeDtypeStruct((num_graphs, 8), jnp.float32),
        in_specs=[pl.BlockSpec(memory_space=pltpu.MemorySpace.VMEM)
                  for _ in readout_ins],
        out_specs=pl.BlockSpec(memory_space=pltpu.MemorySpace.VMEM),
        compiler_params=pltpu.CompilerParams(vmem_limit_bytes=32 * 1024 * 1024),
    )(*readout_ins)


# --------------------- deterministic parameter init ------------------------ #

def init_params(key):
    def lin(k, fan_in, fan_out, bias=True, scale=0.1):
        k1, k2 = jax.random.split(k)
        w = (jax.random.normal(k1, (fan_in, fan_out), jnp.float32) * scale,)
        if bias:
            w = w + (jax.random.normal(k2, (1, fan_out), jnp.float32) * scale,)
        return list(w)

    keys = jax.random.split(key, 16)
    p = []
    # conv1
    p += lin(keys[0], 1, 4) + lin(keys[1], 4, 4)          # pixel_embedding
    p += lin(keys[2], 1, 8) + lin(keys[3], 8, 8)          # dist_embedding
    p += lin(keys[4], 16, 8) + lin(keys[5], 8, 8)         # mlp
    # conv2
    p += lin(keys[6], 8, 8) + lin(keys[7], 8, 8)          # pixel_embedding
    p += lin(keys[8], 1, 8) + lin(keys[9], 8, 8)          # dist_embedding
    p += lin(keys[10], 24, 16) + lin(keys[11], 16, 16)    # mlp
    # readout
    p += lin(keys[12], 16, 8, bias=False)                 # r_w1 (no bias)
    p += [jnp.ones((1, 8), jnp.float32),                  # bn gamma
          jnp.zeros((1, 8), jnp.float32),                 # bn beta
          jnp.zeros((1, 8), jnp.float32),                 # bn running_mean
          jnp.ones((1, 8), jnp.float32)]                  # bn running_var
    p += lin(keys[13], 8, 8)                              # r_w2, r_b2
    return p


# ------------------------- pure-JAX reference ------------------------------ #

def ref_forward(x, pos, edge_index, batch, params, num_graphs):
    p = list(params)

    def mlp2(h, w1, b1, w2, b2):
        return jax.nn.relu(h @ w1 + b1) @ w2 + b2

    src, tgt = edge_index[0], edge_index[1]
    dist = jnp.sqrt(jnp.sum((pos[tgt] - pos[src]) ** 2, axis=1, keepdims=True))

    def conv(h, o):
        x_i, x_j = h[tgt], h[src]
        ef = jnp.concatenate([mlp2(x_i, *p[o:o + 4]),
                              mlp2(x_j, *p[o:o + 4]),
                              mlp2(dist, *p[o + 4:o + 8])], axis=-1)
        msg = mlp2(ef, *p[o + 8:o + 12])
        return jax.ops.segment_sum(msg, tgt, num_segments=x.shape[0])

    h = jax.nn.relu(conv(x, 0))
    h = jax.nn.relu(conv(h, 12))
    g = jax.ops.segment_sum(h, batch, num_segments=num_graphs)
    r = g @ p[24]
    r = (r - p[27]) / jnp.sqrt(p[28] + 1e-5) * p[25] + p[26]
    r = jax.nn.relu(r)
    return r @ p[29] + p[30]


# --------------------------------- main ------------------------------------ #

def make_inputs(key, num_graphs=2, side=8):
    n_per = side * side
    n = num_graphs * n_per
    # 4-neighbour grid graph per image (both directions)
    edges = []
    for g in range(num_graphs):
        off = g * n_per
        for r in range(side):
            for c in range(side):
                u = off + r * side + c
                if c + 1 < side:
                    v = u + 1
                    edges += [(u, v), (v, u)]
                if r + 1 < side:
                    v = u + side
                    edges += [(u, v), (v, u)]
    edge_index = jnp.asarray(np.array(edges, dtype=np.int32).T)          # [2, E]

    rr, cc = np.meshgrid(np.arange(side), np.arange(side), indexing="ij")
    pos_one = np.stack([rr.ravel(), cc.ravel()], axis=1).astype(np.float32)
    pos = jnp.asarray(np.concatenate([pos_one] * num_graphs, axis=0))    # [N, 2]

    x = jax.random.uniform(key, (n, 1), jnp.float32)                     # pixels [N, 1]
    batch = jnp.asarray(np.repeat(np.arange(num_graphs, dtype=np.int32), n_per))
    return x, pos, edge_index, batch


if __name__ == "__main__":
    key = jax.random.PRNGKey(0)
    k_x, k_p = jax.random.split(key)

    num_graphs, side = 2, 8      # N = 128 nodes, E = 448 edges -> 4 edge tiles of 128
    x, pos, edge_index, batch = make_inputs(k_x, num_graphs, side)
    params = init_params(k_p)

    out = gcn_encoder_forward(x, pos, edge_index, batch, params, num_graphs,
                              edge_tile=128)
    out = jax.block_until_ready(out)

    ref = jax.block_until_ready(ref_forward(x, pos, edge_index, batch, params,
                                            num_graphs))
    # tolerance accounts for bf16 MXU operands (gather/scatter/pool) with f32 accumulation
    np.testing.assert_allclose(np.asarray(out), np.asarray(ref), rtol=5e-2, atol=5e-2)

    print("KERNEL_OK")
</pallas_src>

<mosaic_0001>
module attributes {stable_mosaic.version = 11 : i64} {
  func.func @conv_kernel(%arg0: i32, %arg1: memref<128x1xi32, #tpu.memory_space<vmem>>, %arg2: memref<128x1xi32, #tpu.memory_space<vmem>>, %arg3: memref<1x128xi32, #tpu.memory_space<vmem>>, %arg4: memref<128x1xf32, #tpu.memory_space<vmem>>, %arg5: memref<128x2xf32, #tpu.memory_space<vmem>>, %arg6: memref<1x4xf32, #tpu.memory_space<vmem>>, %arg7: memref<1x4xf32, #tpu.memory_space<vmem>>, %arg8: memref<4x8xf32, #tpu.memory_space<vmem>>, %arg9: memref<4x8xf32, #tpu.memory_space<vmem>>, %arg10: memref<1x8xf32, #tpu.memory_space<vmem>>, %arg11: memref<1x8xf32, #tpu.memory_space<vmem>>, %arg12: memref<8x8xf32, #tpu.memory_space<vmem>>, %arg13: memref<1x8xf32, #tpu.memory_space<vmem>>, %arg14: memref<8x8xf32, #tpu.memory_space<vmem>>, %arg15: memref<1x8xf32, #tpu.memory_space<vmem>>, %arg16: memref<128x8xf32, #tpu.memory_space<vmem>>, %arg17: memref<128x18xbf16, #tpu.memory_space<vmem>>, %arg18: memref<128x8xf32, #tpu.memory_space<vmem>>) attributes {dimension_semantics = [#tpu.dimension_semantics<arbitrary>], iteration_bounds = array<i64: 4>, scalar_prefetch = 0 : i64, scratch_operands = 2 : i64, tpu.core_type = #tpu.core_type<tc>, window_params = [{transform_indices = @transform_0, window_bounds = array<i64: 128, 1>}, {transform_indices = @transform_1, window_bounds = array<i64: 128, 1>}, {transform_indices = @transform_2, window_bounds = array<i64: 1, 128>}, {pipeline_mode = #tpu.pipeline_mode<synchronous>, transform_indices = @transform_3, window_bounds = array<i64: 128, 1>}, {pipeline_mode = #tpu.pipeline_mode<synchronous>, transform_indices = @transform_4, window_bounds = array<i64: 128, 2>}, {pipeline_mode = #tpu.pipeline_mode<synchronous>, transform_indices = @transform_5, window_bounds = array<i64: 1, 4>}, {pipeline_mode = #tpu.pipeline_mode<synchronous>, transform_indices = @transform_6, window_bounds = array<i64: 1, 4>}, {pipeline_mode = #tpu.pipeline_mode<synchronous>, transform_indices = @transform_7, window_bounds = array<i64: 4, 8>}, {pipeline_mode = #tpu.pipeline_mode<synchronous>, transform_indices = @transform_8, window_bounds = array<i64: 4, 8>}, {pipeline_mode = #tpu.pipeline_mode<synchronous>, transform_indices = @transform_9, window_bounds = array<i64: 1, 8>}, {pipeline_mode = #tpu.pipeline_mode<synchronous>, transform_indices = @transform_10, window_bounds = array<i64: 1, 8>}, {pipeline_mode = #tpu.pipeline_mode<synchronous>, transform_indices = @transform_11, window_bounds = array<i64: 8, 8>}, {pipeline_mode = #tpu.pipeline_mode<synchronous>, transform_indices = @transform_12, window_bounds = array<i64: 1, 8>}, {pipeline_mode = #tpu.pipeline_mode<synchronous>, transform_indices = @transform_13, window_bounds = array<i64: 8, 8>}, {pipeline_mode = #tpu.pipeline_mode<synchronous>, transform_indices = @transform_14, window_bounds = array<i64: 1, 8>}, {pipeline_mode = #tpu.pipeline_mode<synchronous>, transform_indices = @transform_15, window_bounds = array<i64: 128, 8>}]} {
    %c0_i32 = arith.constant 0 : i32
    %0 = arith.cmpi eq, %arg0, %c0_i32 : i32
    %1 = arith.extui %0 : i1 to i32
    %c0_i32_0 = arith.constant 0 : i32
    %2 = arith.cmpi ne, %1, %c0_i32_0 : i32
    scf.if %2 {
      %c0_32 = arith.constant 0 : index
      %c0_33 = arith.constant 0 : index
      %80 = vector.load %arg4[%c0_32, %c0_33] : memref<128x1xf32, #tpu.memory_space<vmem>>, vector<128x1xf32>
      %c0_34 = arith.constant 0 : index
      %c0_35 = arith.constant 0 : index
      %81 = vector.load %arg6[%c0_34, %c0_35] : memref<1x4xf32, #tpu.memory_space<vmem>>, vector<1x4xf32>
      %82 = vector.broadcast %80 : vector<128x1xf32> to vector<128x4xf32>
      %83 = vector.broadcast %81 : vector<1x4xf32> to vector<128x4xf32>
      %84 = arith.mulf %82, %83 : vector<128x4xf32>
      %c0_36 = arith.constant 0 : index
      %c0_37 = arith.constant 0 : index
      %85 = vector.load %arg7[%c0_36, %c0_37] : memref<1x4xf32, #tpu.memory_space<vmem>>, vector<1x4xf32>
      %86 = vector.broadcast %85 : vector<1x4xf32> to vector<128x4xf32>
      %87 = arith.addf %84, %86 : vector<128x4xf32>
      %cst_38 = arith.constant 0.000000e+00 : f32
      %88 = vector.broadcast %cst_38 : f32 to vector<128x4xf32>
      %89 = arith.maximumf %87, %88 : vector<128x4xf32>
      %c0_39 = arith.constant 0 : index
      %c0_40 = arith.constant 0 : index
      %90 = vector.load %arg8[%c0_39, %c0_40] : memref<4x8xf32, #tpu.memory_space<vmem>>, vector<4x8xf32>
      %cst_41 = arith.constant dense<0.000000e+00> : vector<128x8xf32>
      %91 = tpu.matmul %89, %90, %cst_41 {dimension_numbers = #tpu.dot_dimension_numbers<[1], [0], [0], [1], [0, 0, 1, 1], [], []>} : vector<128x4xf32>, vector<4x8xf32>, vector<128x8xf32> -> vector<128x8xf32>
      %c0_42 = arith.constant 0 : index
      %c0_43 = arith.constant 0 : index
      %92 = vector.load %arg9[%c0_42, %c0_43] : memref<4x8xf32, #tpu.memory_space<vmem>>, vector<4x8xf32>
      %cst_44 = arith.constant dense<0.000000e+00> : vector<128x8xf32>
      %93 = tpu.matmul %89, %92, %cst_44 {dimension_numbers = #tpu.dot_dimension_numbers<[1], [0], [0], [1], [0, 0, 1, 1], [], []>} : vector<128x4xf32>, vector<4x8xf32>, vector<128x8xf32> -> vector<128x8xf32>
      %c0_45 = arith.constant 0 : index
      %c0_46 = arith.constant 0 : index
      %94 = vector.load %arg5[%c0_45, %c0_46] : memref<128x2xf32, #tpu.memory_space<vmem>>, vector<128x2xf32>
      %95 = tpu.concatenate %94, %91, %93 in 1 : vector<128x2xf32>, vector<128x8xf32>, vector<128x8xf32> -> vector<128x18xf32>
      %96 = arith.truncf %95 : vector<128x18xf32> to vector<128x18xbf16>
      %c0_47 = arith.constant 0 : index
      %c0_48 = arith.constant 0 : index
      %97 = vector.load %arg17[%c0_47, %c0_48] : memref<128x18xbf16, #tpu.memory_space<vmem>>, vector<128x18xbf16>
      tpu.vector_store %arg17[%c0_47, %c0_48], %96 {strides = array<i32>} : memref<128x18xbf16, #tpu.memory_space<vmem>>, vector<128x18xbf16>,
      %cst_49 = arith.constant 0.000000e+00 : f32
      %98 = vector.broadcast %cst_49 : f32 to vector<128x8xf32>
      %c0_50 = arith.constant 0 : index
      %c0_51 = arith.constant 0 : index
      %99 = vector.load %arg18[%c0_50, %c0_51] : memref<128x8xf32, #tpu.memory_space<vmem>>, vector<128x8xf32>
      tpu.vector_store %arg18[%c0_50, %c0_51], %98 {strides = array<i32>} : memref<128x8xf32, #tpu.memory_space<vmem>>, vector<128x8xf32>,
    } else {
    }
    %c0 = arith.constant 0 : index
    %c0_1 = arith.constant 0 : index
    %3 = vector.load %arg1[%c0, %c0_1] : memref<128x1xi32, #tpu.memory_space<vmem>>, vector<128x1xi32>
    %c0_2 = arith.constant 0 : index
    %c0_3 = arith.constant 0 : index
    %4 = vector.load %arg2[%c0_2, %c0_3] : memref<128x1xi32, #tpu.memory_space<vmem>>, vector<128x1xi32>
    %c0_4 = arith.constant 0 : index
    %c0_5 = arith.constant 0 : index
    %5 = vector.load %arg3[%c0_4, %c0_5] : memref<1x128xi32, #tpu.memory_space<vmem>>, vector<1x128xi32>
    %6 = tpu.iota {dimensions = array<i32: 1>} : vector<128x128xi32>
    %7 = vector.broadcast %4 : vector<128x1xi32> to vector<128x128xi32>
    %8 = arith.cmpi eq, %6, %7 : vector<128x128xi32>
    %9 = arith.extui %8 : vector<128x128xi1> to vector<128x128xi32>
    %10 = arith.sitofp %9 : vector<128x128xi32> to vector<128x128xf32>
    %11 = arith.truncf %10 : vector<128x128xf32> to vector<128x128xbf16>
    %12 = vector.broadcast %3 : vector<128x1xi32> to vector<128x128xi32>
    %13 = arith.cmpi eq, %6, %12 : vector<128x128xi32>
    %14 = arith.extui %13 : vector<128x128xi1> to vector<128x128xi32>
    %15 = arith.sitofp %14 : vector<128x128xi32> to vector<128x128xf32>
    %16 = arith.truncf %15 : vector<128x128xf32> to vector<128x128xbf16>
    %17 = tpu.iota {dimensions = array<i32: 0>} : vector<128x128xi32>
    %18 = vector.broadcast %5 : vector<1x128xi32> to vector<128x128xi32>
    %19 = arith.cmpi eq, %17, %18 : vector<128x128xi32>
    %20 = arith.extui %19 : vector<128x128xi1> to vector<128x128xi32>
    %21 = arith.sitofp %20 : vector<128x128xi32> to vector<128x128xf32>
    %22 = arith.truncf %21 : vector<128x128xf32> to vector<128x128xbf16>
    %c0_6 = arith.constant 0 : index
    %c0_7 = arith.constant 0 : index
    %23 = vector.load %arg17[%c0_6, %c0_7] : memref<128x18xbf16, #tpu.memory_space<vmem>>, vector<128x18xbf16>
    %cst = arith.constant dense<0.000000e+00> : vector<128x18xf32>
    %24 = tpu.matmul %11, %23, %cst {dimension_numbers = #tpu.dot_dimension_numbers<[1], [0], [0], [1], [0, 0, 1, 1], [], []>} : vector<128x128xbf16>, vector<128x18xbf16>, vector<128x18xf32> -> vector<128x18xf32>
    %cst_8 = arith.constant dense<0.000000e+00> : vector<128x18xf32>
    %25 = tpu.matmul %16, %23, %cst_8 {dimension_numbers = #tpu.dot_dimension_numbers<[1], [0], [0], [1], [0, 0, 1, 1], [], []>} : vector<128x128xbf16>, vector<128x18xbf16>, vector<128x18xf32> -> vector<128x18xf32>
    %26 = vector.extract_strided_slice %24 {offsets = [0, 0], sizes = [128, 2], strides = [1, 1]} : vector<128x18xf32> to vector<128x2xf32>
    %27 = vector.extract_strided_slice %25 {offsets = [0, 0], sizes = [128, 2], strides = [1, 1]} : vector<128x18xf32> to vector<128x2xf32>
    %28 = arith.subf %26, %27 : vector<128x2xf32>
    %29 = vector.extract_strided_slice %28 {offsets = [0, 0], sizes = [128, 1], strides = [1, 1]} : vector<128x2xf32> to vector<128x1xf32>
    %30 = vector.extract_strided_slice %28 {offsets = [0, 0], sizes = [128, 1], strides = [1, 1]} : vector<128x2xf32> to vector<128x1xf32>
    %31 = arith.mulf %29, %30 : vector<128x1xf32>
    %32 = vector.extract_strided_slice %28 {offsets = [0, 1], sizes = [128, 1], strides = [1, 1]} : vector<128x2xf32> to vector<128x1xf32>
    %33 = vector.extract_strided_slice %28 {offsets = [0, 1], sizes = [128, 1], strides = [1, 1]} : vector<128x2xf32> to vector<128x1xf32>
    %34 = arith.mulf %32, %33 : vector<128x1xf32>
    %35 = arith.addf %31, %34 : vector<128x1xf32>
    %36 = math.sqrt %35 : vector<128x1xf32>
    %c0_9 = arith.constant 0 : index
    %c0_10 = arith.constant 0 : index
    %37 = vector.load %arg10[%c0_9, %c0_10] : memref<1x8xf32, #tpu.memory_space<vmem>>, vector<1x8xf32>
    %38 = vector.broadcast %36 : vector<128x1xf32> to vector<128x8xf32>
    %39 = vector.broadcast %37 : vector<1x8xf32> to vector<128x8xf32>
    %40 = arith.mulf %38, %39 : vector<128x8xf32>
    %c0_11 = arith.constant 0 : index
    %c0_12 = arith.constant 0 : index
    %41 = vector.load %arg11[%c0_11, %c0_12] : memref<1x8xf32, #tpu.memory_space<vmem>>, vector<1x8xf32>
    %42 = vector.broadcast %41 : vector<1x8xf32> to vector<128x8xf32>
    %43 = arith.addf %40, %42 : vector<128x8xf32>
    %cst_13 = arith.constant 0.000000e+00 : f32
    %44 = vector.broadcast %cst_13 : f32 to vector<128x8xf32>
    %45 = arith.maximumf %43, %44 : vector<128x8xf32>
    %46 = vector.extract_strided_slice %24 {offsets = [0, 2], sizes = [128, 8], strides = [1, 1]} : vector<128x18xf32> to vector<128x8xf32>
    %47 = vector.extract_strided_slice %25 {offsets = [0, 10], sizes = [128, 8], strides = [1, 1]} : vector<128x18xf32> to vector<128x8xf32>
    %48 = arith.addf %46, %47 : vector<128x8xf32>
    %c0_14 = arith.constant 0 : index
    %c0_15 = arith.constant 0 : index
    %49 = vector.load %arg12[%c0_14, %c0_15] : memref<8x8xf32, #tpu.memory_space<vmem>>, vector<8x8xf32>
    %cst_16 = arith.constant dense<0.000000e+00> : vector<128x8xf32>
    %50 = tpu.matmul %45, %49, %cst_16 {dimension_numbers = #tpu.dot_dimension_numbers<[1], [0], [0], [1], [0, 0, 1, 1], [], []>} : vector<128x8xf32>, vector<8x8xf32>, vector<128x8xf32> -> vector<128x8xf32>
    %51 = arith.addf %48, %50 : vector<128x8xf32>
    %c0_17 = arith.constant 0 : index
    %c0_18 = arith.constant 0 : index
    %52 = vector.load %arg13[%c0_17, %c0_18] : memref<1x8xf32, #tpu.memory_space<vmem>>, vector<1x8xf32>
    %53 = vector.broadcast %52 : vector<1x8xf32> to vector<128x8xf32>
    %54 = arith.addf %51, %53 : vector<128x8xf32>
    %cst_19 = arith.constant 0.000000e+00 : f32
    %55 = vector.broadcast %cst_19 : f32 to vector<128x8xf32>
    %56 = arith.maximumf %54, %55 : vector<128x8xf32>
    %c0_20 = arith.constant 0 : index
    %c0_21 = arith.constant 0 : index
    %57 = vector.load %arg14[%c0_20, %c0_21] : memref<8x8xf32, #tpu.memory_space<vmem>>, vector<8x8xf32>
    %cst_22 = arith.constant dense<0.000000e+00> : vector<128x8xf32>
    %58 = tpu.matmul %56, %57, %cst_22 {dimension_numbers = #tpu.dot_dimension_numbers<[1], [0], [0], [1], [0, 0, 1, 1], [], []>} : vector<128x8xf32>, vector<8x8xf32>, vector<128x8xf32> -> vector<128x8xf32>
    %c0_23 = arith.constant 0 : index
    %c0_24 = arith.constant 0 : index
    %59 = vector.load %arg15[%c0_23, %c0_24] : memref<1x8xf32, #tpu.memory_space<vmem>>, vector<1x8xf32>
    %60 = vector.broadcast %59 : vector<1x8xf32> to vector<128x8xf32>
    %61 = arith.addf %58, %60 : vector<128x8xf32>
    %c128_i32 = arith.constant 128 : i32
    %62 = arith.muli %arg0, %c128_i32 : i32
    %63 = tpu.iota {dimensions = array<i32: 0>} : vector<128x1xi32>
    %64 = vector.broadcast %62 : i32 to vector<128x1xi32>
    %65 = arith.addi %64, %63 : vector<128x1xi32>
    %c448_i32 = arith.constant 448 : i32
    %66 = vector.broadcast %c448_i32 : i32 to vector<128x1xi32>
    %67 = arith.cmpi slt, %65, %66 : vector<128x1xi32>
    %cst_25 = arith.constant 0.000000e+00 : f32
    %68 = vector.shape_cast %67 : vector<128x1xi1> to vector<128x1xi1>
    %69 = vector.broadcast %68 : vector<128x1xi1> to vector<128x8xi1>
    %70 = vector.broadcast %cst_25 : f32 to vector<128x8xf32>
    %71 = arith.select %69, %61, %70 : vector<128x8xi1>, vector<128x8xf32>
    %c0_26 = arith.constant 0 : index
    %c0_27 = arith.constant 0 : index
    %72 = vector.load %arg18[%c0_26, %c0_27] : memref<128x8xf32, #tpu.memory_space<vmem>>, vector<128x8xf32>
    %73 = arith.truncf %71 : vector<128x8xf32> to vector<128x8xbf16>
    %cst_28 = arith.constant dense<0.000000e+00> : vector<128x8xf32>
    %74 = tpu.matmul %22, %73, %cst_28 {dimension_numbers = #tpu.dot_dimension_numbers<[1], [0], [0], [1], [0, 0, 1, 1], [], []>} : vector<128x128xbf16>, vector<128x8xbf16>, vector<128x8xf32> -> vector<128x8xf32>
    %75 = arith.addf %72, %74 : vector<128x8xf32>
    %c0_29 = arith.constant 0 : index
    %c0_30 = arith.constant 0 : index
    %76 = vector.load %arg18[%c0_29, %c0_30] : memref<128x8xf32, #tpu.memory_space<vmem>>, vector<128x8xf32>
    tpu.vector_store %arg18[%c0_29, %c0_30], %75 {strides = array<i32>} : memref<128x8xf32, #tpu.memory_space<vmem>>, vector<128x8xf32>,
    %c3_i32 = arith.constant 3 : i32
    %77 = arith.cmpi eq, %arg0, %c3_i32 : i32
    %78 = arith.extui %77 : i1 to i32
    %c0_i32_31 = arith.constant 0 : i32
    %79 = arith.cmpi ne, %78, %c0_i32_31 : i32
    scf.if %79 {
      %c0_32 = arith.constant 0 : index
      %c0_33 = arith.constant 0 : index
      %80 = vector.load %arg18[%c0_32, %c0_33] : memref<128x8xf32, #tpu.memory_space<vmem>>, vector<128x8xf32>
      %cst_34 = arith.constant 0.000000e+00 : f32
      %81 = vector.broadcast %cst_34 : f32 to vector<128x8xf32>
      %82 = arith.maximumf %80, %81 : vector<128x8xf32>
      %c0_35 = arith.constant 0 : index
      %c0_36 = arith.constant 0 : index
      %83 = vector.load %arg16[%c0_35, %c0_36] : memref<128x8xf32, #tpu.memory_space<vmem>>, vector<128x8xf32>
      tpu.vector_store %arg16[%c0_35, %c0_36], %82 {strides = array<i32>} : memref<128x8xf32, #tpu.memory_space<vmem>>, vector<128x8xf32>,
    } else {
    }
    return
  }
  func.func @transform_0(%arg0: i32) -> (i32, i32) {
    %c0_i32 = arith.constant 0 : i32
    %c0_i32_0 = arith.constant 0 : i32
    return %arg0, %c0_i32 : i32, i32
  }
  func.func @transform_1(%arg0: i32) -> (i32, i32) {
    %c0_i32 = arith.constant 0 : i32
    %c0_i32_0 = arith.constant 0 : i32
    return %arg0, %c0_i32 : i32, i32
  }
  func.func @transform_2(%arg0: i32) -> (i32, i32) {
    %c0_i32 = arith.constant 0 : i32
    %c0_i32_0 = arith.constant 0 : i32
    return %c0_i32, %arg0 : i32, i32
  }
  func.func @transform_3(%arg0: i32) -> (i32, i32) {
    %c0_i32 = arith.constant 0 : i32
    %c0_i32_0 = arith.constant 0 : i32
    %c0_i32_1 = arith.constant 0 : i32
    return %c0_i32, %c0_i32_0 : i32, i32
  }
  func.func @transform_4(%arg0: i32) -> (i32, i32) {
    %c0_i32 = arith.constant 0 : i32
    %c0_i32_0 = arith.constant 0 : i32
    %c0_i32_1 = arith.constant 0 : i32
    return %c0_i32, %c0_i32_0 : i32, i32
  }
  func.func @transform_5(%arg0: i32) -> (i32, i32) {
    %c0_i32 = arith.constant 0 : i32
    %c0_i32_0 = arith.constant 0 : i32
    %c0_i32_1 = arith.constant 0 : i32
    return %c0_i32, %c0_i32_0 : i32, i32
  }
  func.func @transform_6(%arg0: i32) -> (i32, i32) {
    %c0_i32 = arith.constant 0 : i32
    %c0_i32_0 = arith.constant 0 : i32
    %c0_i32_1 = arith.constant 0 : i32
    return %c0_i32, %c0_i32_0 : i32, i32
  }
  func.func @transform_7(%arg0: i32) -> (i32, i32) {
    %c0_i32 = arith.constant 0 : i32
    %c0_i32_0 = arith.constant 0 : i32
    %c0_i32_1 = arith.constant 0 : i32
    return %c0_i32, %c0_i32_0 : i32, i32
  }
  func.func @transform_8(%arg0: i32) -> (i32, i32) {
    %c0_i32 = arith.constant 0 : i32
    %c0_i32_0 = arith.constant 0 : i32
    %c0_i32_1 = arith.constant 0 : i32
    return %c0_i32, %c0_i32_0 : i32, i32
  }
  func.func @transform_9(%arg0: i32) -> (i32, i32) {
    %c0_i32 = arith.constant 0 : i32
    %c0_i32_0 = arith.constant 0 : i32
    %c0_i32_1 = arith.constant 0 : i32
    return %c0_i32, %c0_i32_0 : i32, i32
  }
  func.func @transform_10(%arg0: i32) -> (i32, i32) {
    %c0_i32 = arith.constant 0 : i32
    %c0_i32_0 = arith.constant 0 : i32
    %c0_i32_1 = arith.constant 0 : i32
    return %c0_i32, %c0_i32_0 : i32, i32
  }
  func.func @transform_11(%arg0: i32) -> (i32, i32) {
    %c0_i32 = arith.constant 0 : i32
    %c0_i32_0 = arith.constant 0 : i32
    %c0_i32_1 = arith.constant 0 : i32
    return %c0_i32, %c0_i32_0 : i32, i32
  }
  func.func @transform_12(%arg0: i32) -> (i32, i32) {
    %c0_i32 = arith.constant 0 : i32
    %c0_i32_0 = arith.constant 0 : i32
    %c0_i32_1 = arith.constant 0 : i32
    return %c0_i32, %c0_i32_0 : i32, i32
  }
  func.func @transform_13(%arg0: i32) -> (i32, i32) {
    %c0_i32 = arith.constant 0 : i32
    %c0_i32_0 = arith.constant 0 : i32
    %c0_i32_1 = arith.constant 0 : i32
    return %c0_i32, %c0_i32_0 : i32, i32
  }
  func.func @transform_14(%arg0: i32) -> (i32, i32) {
    %c0_i32 = arith.constant 0 : i32
    %c0_i32_0 = arith.constant 0 : i32
    %c0_i32_1 = arith.constant 0 : i32
    return %c0_i32, %c0_i32_0 : i32, i32
  }
  func.func @transform_15(%arg0: i32) -> (i32, i32) {
    %c0_i32 = arith.constant 0 : i32
    %c0_i32_0 = arith.constant 0 : i32
    %c0_i32_1 = arith.constant 0 : i32
    return %c0_i32, %c0_i32_0 : i32, i32
  }
}

</mosaic_0001>

<bundles_post_ra>
// kernel: tpu_custom_call.1
= control target key start
LH: loop header
LB: loop body
LE: loop exit
PB: predicated region body
PF: predicated region fallthrough
CT: control target
= control target key end

     0   :  { %s3864_s18 = smov 0   ;;  %s4826_s0 = inlined_call_operand.vmem [shape: s32[512,1], index: 0, kind: input, shape index: {}]   ;;  %s4827_s1 = inlined_call_operand.vmem [shape: s32[512,1], index: 1, kind: input, shape index: {}]   ;;  %s4828_s2 = inlined_call_operand.vmem [shape: s32[1,512], index: 2, kind: input, shape index: {}]   ;;  %s4829_s3 = inlined_call_operand.vmem [shape: f32[128,1], index: 3, kind: input, shape index: {}]   ;;  %s4830_s4 = inlined_call_operand.vmem [shape: f32[128,2], index: 4, kind: input, shape index: {}]   ;;  %s4831_s5 = inlined_call_operand.vmem [shape: f32[1,4], index: 5, kind: input, shape index: {}]   ;;  %s4832_s6 = inlined_call_operand.vmem [shape: f32[1,4], index: 6, kind: input, shape index: {}]   ;;  %s4833_s7 = inlined_call_operand.vmem [shape: f32[4,8], index: 7, kind: input, shape index: {}]   ;;  %s4834_s8 = inlined_call_operand.vmem [shape: f32[4,8], index: 8, kind: input, shape index: {}]   ;;  %s4835_s9 = inlined_call_operand.vmem [shape: f32[1,8], index: 9, kind: input, shape index: {}]   ;;  %s4836_s10 = inlined_call_operand.vmem [shape: f32[1,8], index: 10, kind: input, shape index: {}]   ;;  %s4837_s11 = inlined_call_operand.vmem [shape: f32[8,8], index: 11, kind: input, shape index: {}]   ;;  %s4838_s12 = inlined_call_operand.vmem [shape: f32[1,8], index: 12, kind: input, shape index: {}]   ;;  %s4839_s13 = inlined_call_operand.vmem [shape: f32[8,8], index: 13, kind: input, shape index: {}]   ;;  %s4840_s14 = inlined_call_operand.vmem [shape: f32[1,8], index: 14, kind: input, shape index: {}]   ;;  %s4841_s15 = inlined_call_operand.vmem [shape: f32[128,8], index: 15, kind: output, shape index: {}]  }
   0x1 LB: > { %4846 = sst [smem:[#allocation4_spill]] %s3772_s18  ;;  %s3870_s19 = sadd.s32 4294967295, %s3772_s18   ;;  %s3772_s18 = sphi %s3864_s18, %s25_s18  }
   0x2   : > { %p3097_p0 = scmp.ge.s32.totalorder %s3772_s18, 1  ;;  %p452_p1 = scmp.lt.s32.totalorder %s3772_s18, 5 }
   0x4   : > { %p453_p2 = pnand %p3097_p0, %p452_p1 }
   0x5   : > { %s3098_s20 = sshll.u32 (!%p453_p2), %s3870_s19, 4  ;;  %p515_p3 = scmp.lt.s32.totalorder (!%p453_p2), %s3870_s19, 3 }
   0x6   : > { %456 = sbr.rel (%p453_p2) target bundleno = 2112 (0x840), region = 80  ;;  %p504_p4 = scmp.lt.s32.totalorder (!%p453_p2), %s3098_s20, 63 }
   0x7   : > { %p3102_p5 = scmp.ne.s32.totalorder (!%p453_p2), %s3870_s19, 0 }
   0xd   : > { %s3877_s21 = scalar_select %p515_p3, %s3870_s19, 3 }
   0xe   : > { %s4867_s20 = smov (!%p504_p4, %s3098_s20), 63  ;;  %522 = sbr.rel (%p3102_p5) target bundleno = 523 (0x20b), region = 84 }
   0xf   : > { %s517_s24 = scalar_lea.vmem %s4828_s2, %s3877_s21  ;;  %s3099_s25 = sshll.u32 %s4867_s20, 3  ;;  %v525_v0 = vld [vmem:[%s4829_s3 + $0x10] sm:$0xff] (!%p3102_p5)  ;;  %v523_v1 = vld [vmem:[%s4829_s3] sm:$0xff] (!%p3102_p5)  ;;  %v3774_v2 = vmov (!%p3102_p5), 0   ;;  %v526_v3 = vld [vmem:[%s4829_s3 + $0x18] sm:$0xff] (!%p3102_p5)  ;;  %vm731_vm0 = vcmask (!%p3102_p5), 1043456  }
  0x10   : > { %s3886_s28 = scalar_lea.vmem %s4826_s0, %s3099_s25  ;;  %s3891_s16 = scalar_lea.vmem %s4827_s1, %s3099_s25  ;;  %3651 = vset.pattern.permute.xlu1 (!%p3102_p5), %v3774_v2  ;;  %3650 = vset.pattern.permute.xlu0 (!%p3102_p5), %v3774_v2  ;;  %v524_v4 = vld [vmem:[%s4829_s3 + $0x8] sm:$0xff] (!%p3102_p5)  ;;  %v527_v6 = vld [vmem:[%s4829_s3 + $0x20] sm:$0xff] (!%p3102_p5)  ;;  %v530_v9 = vld [vmem:[%s4829_s3 + $0x38] sm:$0xff] (!%p3102_p5)  ;;  %vm682_vm1 = vcmask (!%p3102_p5), 31744   ;;  %vm1224_vm2 = vcmask (!%p3102_p5), 64512   ;;  %vm1173_vm3 = vcmask (!%p3102_p5), 15360  }
  0x11   : > { %552 = vperm.xlu1 (!%p3102_p5), %3651, %v525_v0   ;;  %542 = vperm.xlu0 (!%p3102_p5), %3650, %v523_v1   ;;  %v528_v5 = vld [vmem:[%s4829_s3 + $0x28] sm:$0xff] (!%p3102_p5)  ;;  %v681_v7 = vld [vmem:[%s4833_s7] sm:$0xf] (!%p3102_p5)  ;;  %v529_v10 = vld [vmem:[%s4829_s3 + $0x30] sm:$0xff] (!%p3102_p5)  ;;  %s3775_s30 = smov (!%p3102_p5), 2   ;;  %s3776_s17 = smov (!%p3102_p5), 10  }
  0x12   : > { %v880_v8 = vld [vmem:[%s4834_s8] sm:$0xf] (!%p3102_p5)  ;;  %3416 = vmatprep.subr.msk.mxu0 (!%p3102_p5), %vm731_vm0, %v681_v7  ;;  %v532_v11 = vld [vmem:[%s4829_s3 + $0x48] sm:$0xff] (!%p3102_p5)  ;;  %v534_v13 = vld [vmem:[%s4829_s3 + $0x58] sm:$0xff] (!%p3102_p5)  ;;  %vm1190_vm4 = vcmask (!%p3102_p5), 80896   ;;  %vm1215_vm5 = vcmask (!%p3102_p5), 146432  }
  0x13   : > { %3442 = vmatprep.subr.msk.mxu1 (!%p3102_p5), %vm731_vm0, %v880_v8  ;;  %3417 = vmatpush3.msk.msra.mxu0 (!%p3102_p5), %vm731_vm0, %v681_v7  ;;  %v531_v12 = vld [vmem:[%s4829_s3 + $0x40] sm:$0xff] (!%p3102_p5)  ;;  %v533_v14 = vld [vmem:[%s4829_s3 + $0x50] sm:$0xff] (!%p3102_p5)  ;;  %v536_v15 = vld [vmem:[%s4829_s3 + $0x68] sm:$0xff] (!%p3102_p5) }
  0x14   : > { %3443 = vmatpush3.msk.msra.mxu1 (!%p3102_p5), %vm731_vm0, %v880_v8  ;;  %v535_v16 = vld [vmem:[%s4829_s3 + $0x60] sm:$0xff] (!%p3102_p5)  ;;  %v538_v17 = vld [vmem:[%s4829_s3 + $0x78] sm:$0xff] (!%p3102_p5)  ;;  %v537_v18 = vld [vmem:[%s4829_s3 + $0x70] sm:$0xff] (!%p3102_p5) }
  0x15   : > { %557 = vperm.xlu1 %3651, %v526_v3   ;;  %547 = vperm.xlu0 %3650, %v524_v4   ;;  %v3951_v19 = vld [vmem:[%s4831_s5] ss:$0 sm:$0xff] }
  0x16   : > { %v3956_v20 = vld [vmem:[%s4832_s6] ss:$0 sm:$0xff] }
  0x19   : > { %567 = vperm.xlu1 %3651, %v528_v5   ;;  %562 = vperm.xlu0 %3650, %v527_v6  }
  0x1d   : > { %577 = vperm.xlu1 %3651, %v530_v9   ;;  %572 = vperm.xlu0 %3650, %v529_v10  }
  0x21   : > { %587 = vperm.xlu1 %3651, %v532_v11   ;;  %582 = vperm.xlu0 %3650, %v531_v12  }
  0x25   : > { %597 = vperm.xlu1 %3651, %v534_v13   ;;  %592 = vperm.xlu0 %3650, %v533_v14  }
  0x29   : > { %607 = vperm.xlu1 %3651, %v536_v15   ;;  %602 = vperm.xlu0 %3650, %v535_v16  }
  0x2d   : > { %617 = vperm.xlu1 %3651, %v538_v17   ;;  %612 = vperm.xlu0 %3650, %v537_v18  }
  0x90   : > { %v553_v21 = vpop.permute.xlu1 %552  ;;  %v543_v22 = vpop.permute.xlu0 %542 }
  0x91   : > { %v628_v23 = vmul.f32 %v3951_v19, %v553_v21  ;;  %v626_v24 = vmul.f32 %v3951_v19, %v543_v22 }
  0x93   : > { %v649_v25 = vadd.f32 %v3956_v20, %v626_v24  ;;  %v651_v26 = vadd.f32 %v3956_v20, %v628_v23 }
  0x94   : > { %v558_v27 = vpop.permute.xlu1 %557  ;;  %v548_v28 = vpop.permute.xlu0 %547 }
  0x95   : > { %v629_v29 = vmul.f32 %v3951_v19, %v558_v27  ;;  %v627_v30 = vmul.f32 %v3951_v19, %v548_v28  ;;  %v665_v31 = vmax.f32 %v649_v25, 0.0  ;;  %v667_v33 = vmax.f32 %v651_v26, 0.0 }
  0x97   : > { %v650_v32 = vadd.f32 %v3956_v20, %v627_v30  ;;  %3418 = vmatprep.mubr.msk.f32.mxu0 %vm682_vm1, %v665_v31  ;;  %3444 = vmatprep.mubr.msk.f32.mxu1 %vm682_vm1, %v665_v31  ;;  %v652_v34 = vadd.f32 %v3956_v20, %v629_v29 }
  0x98   : > { %v568_v35 = vpop.permute.xlu1 %567  ;;  %v563_v36 = vpop.permute.xlu0 %562 }
  0x99   : > { %v666_v37 = vmax.f32 %v650_v32, 0.0  ;;  %v631_v38 = vmul.f32 %v3951_v19, %v568_v35  ;;  %v630_v39 = vmul.f32 %v3951_v19, %v563_v36  ;;  %v668_v41 = vmax.f32 %v652_v34, 0.0 }
  0x9b   : > { %v653_v40 = vadd.f32 %v3956_v20, %v630_v39  ;;  %3419 = vmatmul.mubr.msk.f32.vlgmr.msra.gmra.mrb[0].mxu0 %vm682_vm1, %v666_v37  ;;  %3445 = vmatmul.mubr.msk.f32.vlgmr.msra.gmra.mrb[0].mxu1 %vm682_vm1, %v666_v37  ;;  %v654_v44 = vadd.f32 %v3956_v20, %v631_v38 }
  0x9c   : > { %v578_v42 = vpop.permute.xlu1 %577  ;;  %3421 = vmatprep.mubr.msk.f32.mxu0 %vm682_vm1, %v667_v33  ;;  %3447 = vmatprep.mubr.msk.f32.mxu1 %vm682_vm1, %v667_v33  ;;  %v573_v43 = vpop.permute.xlu0 %572 }
  0x9d   : > { %v669_v45 = vmax.f32 %v653_v40, 0.0  ;;  %v633_v46 = vmul.f32 %v3951_v19, %v578_v42  ;;  %v632_v47 = vmul.f32 %v3951_v19, %v573_v43  ;;  %v670_v52 = vmax.f32 %v654_v44, 0.0 }
  0x9f   : > { %v655_v48 = vadd.f32 %v3956_v20, %v632_v47  ;;  %3422 = vmatmul.mubr.msk.f32.gmra.mrb[2].mxu0 %vm682_vm1, %v668_v41  ;;  %3448 = vmatmul.mubr.msk.f32.gmra.mrb[2].mxu1 %vm682_vm1, %v668_v41  ;;  %v656_v49 = vadd.f32 %v3956_v20, %v633_v46 }
  0xa0   : > { %v588_v50 = vpop.permute.xlu1 %587  ;;  %3424 = vmatprep.mubr.msk.f32.mxu0 %vm682_vm1, %v669_v45  ;;  %3450 = vmatprep.mubr.msk.f32.mxu1 %vm682_vm1, %v669_v45  ;;  %v583_v51 = vpop.permute.xlu0 %582 }
  0xa1   : > { %v671_v53 = vmax.f32 %v655_v48, 0.0  ;;  %v635_v54 = vmul.f32 %v3951_v19, %v588_v50  ;;  %v634_v55 = vmul.f32 %v3951_v19, %v583_v51  ;;  %v672_v57 = vmax.f32 %v656_v49, 0.0 }
  0xa3   : > { %v657_v56 = vadd.f32 %v3956_v20, %v634_v55  ;;  %3425 = vmatmul.mubr.msk.f32.gmra.mrb[4].mxu0 %vm682_vm1, %v670_v52  ;;  %3451 = vmatmul.mubr.msk.f32.gmra.mrb[4].mxu1 %vm682_vm1, %v670_v52  ;;  %v658_v60 = vadd.f32 %v3956_v20, %v635_v54 }
  0xa4   : > { %v598_v58 = vpop.permute.xlu1 %597  ;;  %3427 = vmatprep.mubr.msk.f32.mxu0 %vm682_vm1, %v671_v53  ;;  %3453 = vmatprep.mubr.msk.f32.mxu1 %vm682_vm1, %v671_v53  ;;  %v593_v59 = vpop.permute.xlu0 %592 }
  0xa5   : > { %v673_v61 = vmax.f32 %v657_v56, 0.0  ;;  %v637_v62 = vmul.f32 %v3951_v19, %v598_v58  ;;  %v636_v63 = vmul.f32 %v3951_v19, %v593_v59  ;;  %v674_v4 = vmax.f32 %v658_v60, 0.0 }
  0xa7   : > { %v659_v0 = vadd.f32 %v3956_v20, %v636_v63  ;;  %3428 = vmatmul.mubr.msk.f32.gmra.mrb[6].mxu0 %vm682_vm1, %v672_v57  ;;  %3454 = vmatmul.mubr.msk.f32.gmra.mrb[6].mxu1 %vm682_vm1, %v672_v57  ;;  %v660_v1 = vadd.f32 %v3956_v20, %v637_v62 }
  0xa8   : > { %v608_v2 = vpop.permute.xlu1 %607  ;;  %3430 = vmatprep.mubr.msk.f32.mxu0 %vm682_vm1, %v673_v61  ;;  %3456 = vmatprep.mubr.msk.f32.mxu1 %vm682_vm1, %v673_v61  ;;  %v603_v3 = vpop.permute.xlu0 %602 }
  0xa9   : > { %v675_v5 = vmax.f32 %v659_v0, 0.0  ;;  %v639_v6 = vmul.f32 %v3951_v19, %v608_v2  ;;  %v638_v7 = vmul.f32 %v3951_v19, %v603_v3  ;;  %v676_v9 = vmax.f32 %v660_v1, 0.0 }
  0xaa   : > { %v3777_v1 = vmov 0.0  }
  0xab   : > { %v661_v8 = vadd.f32 %v3956_v20, %v638_v7  ;;  %3431 = vmatmul.mubr.msk.f32.gmra.mrb[8].mxu0 %vm682_vm1, %v674_v4  ;;  %3457 = vmatmul.mubr.msk.f32.gmra.mrb[8].mxu1 %vm682_vm1, %v674_v4  ;;  %v662_v12 = vadd.f32 %v3956_v20, %v639_v6  ;;  %1225 = vst.msk [vmem:[#allocation3] sm:$0xff] %vm1224_vm2, %v3777_v1  ;;  %1226 = vst.msk [vmem:[#allocation3 + $0x8] sm:$0xff] %vm1224_vm2, %v3777_v1 }
  0xac   : > { %v618_v10 = vpop.permute.xlu1 %617  ;;  %3433 = vmatprep.mubr.msk.f32.mxu0 %vm682_vm1, %v675_v5  ;;  %3459 = vmatprep.mubr.msk.f32.mxu1 %vm682_vm1, %v675_v5  ;;  %v613_v11 = vpop.permute.xlu0 %612  ;;  %1227 = vst.msk [vmem:[#allocation3 + $0x10] sm:$0xff] %vm1224_vm2, %v3777_v1  ;;  %1228 = vst.msk [vmem:[#allocation3 + $0x18] sm:$0xff] %vm1224_vm2, %v3777_v1 }
  0xad   : > { %v677_v13 = vmax.f32 %v661_v8, 0.0  ;;  %v641_v14 = vmul.f32 %v3951_v19, %v618_v10  ;;  %v640_v15 = vmul.f32 %v3951_v19, %v613_v11  ;;  %v678_v17 = vmax.f32 %v662_v12, 0.0  ;;  %1229 = vst.msk [vmem:[#allocation3 + $0x20] sm:$0xff] %vm1224_vm2, %v3777_v1  ;;  %1230 = vst.msk [vmem:[#allocation3 + $0x28] sm:$0xff] %vm1224_vm2, %v3777_v1  ;;  %v1030_v10 = vld [vmem:[%s4830_s4 + $0x8] sm:$0xff] }
  0xae   : > { %1231 = vst.msk [vmem:[#allocation3 + $0x30] sm:$0xff] %vm1224_vm2, %v3777_v1  ;;  %1232 = vst.msk [vmem:[#allocation3 + $0x38] sm:$0xff] %vm1224_vm2, %v3777_v1 }
  0xaf   : > { %v663_v16 = vadd.f32 %v3956_v20, %v640_v15  ;;  %3434 = vmatmul.mubr.msk.f32.gmra.mrb[10].mxu0 %vm682_vm1, %v676_v9  ;;  %3460 = vmatmul.mubr.msk.f32.gmra.mrb[10].mxu1 %vm682_vm1, %v676_v9  ;;  %v664_v18 = vadd.f32 %v3956_v20, %v641_v14  ;;  %1233 = vst.msk [vmem:[#allocation3 + $0x40] sm:$0xff] %vm1224_vm2, %v3777_v1  ;;  %1234 = vst.msk [vmem:[#allocation3 + $0x48] sm:$0xff] %vm1224_vm2, %v3777_v1  ;;  %v1029_v9 = vld [vmem:[%s4830_s4] sm:$0xff] }
  0xb0   : > { %3436 = vmatprep.mubr.msk.f32.mxu0 %vm682_vm1, %v677_v13  ;;  %3462 = vmatprep.mubr.msk.f32.mxu1 %vm682_vm1, %v677_v13  ;;  %1235 = vst.msk [vmem:[#allocation3 + $0x50] sm:$0xff] %vm1224_vm2, %v3777_v1  ;;  %1236 = vst.msk [vmem:[#allocation3 + $0x58] sm:$0xff] %vm1224_vm2, %v3777_v1 }
  0xb1   : > { %v679_v21 = vmax.f32 %v663_v16, 0.0  ;;  %v680_v19 = vmax.f32 %v664_v18, 0.0  ;;  %1237 = vst.msk [vmem:[#allocation3 + $0x60] sm:$0xff] %vm1224_vm2, %v3777_v1  ;;  %1238 = vst.msk [vmem:[#allocation3 + $0x68] sm:$0xff] %vm1224_vm2, %v3777_v1 }
  0xb2   : > { %1239 = vst.msk [vmem:[#allocation3 + $0x70] sm:$0xff] %vm1224_vm2, %v3777_v1  ;;  %1240 = vst.msk [vmem:[#allocation3 + $0x78] sm:$0xff] %vm1224_vm2, %v3777_v1 }
  0xb3   : > { %3437 = vmatmul.mubr.msk.f32.gmra.mrb[12].mxu0 %vm682_vm1, %v678_v17  ;;  %3463 = vmatmul.mubr.msk.f32.gmra.mrb[12].mxu1 %vm682_vm1, %v678_v17 }
  0xb4   : > { %3439 = vmatprep.mubr.msk.f32.mxu0 %vm682_vm1, %v679_v21  ;;  %3465 = vmatprep.mubr.msk.f32.mxu1 %vm682_vm1, %v679_v21  ;;  %v1031_v21 = vld [vmem:[%s4830_s4 + $0x10] sm:$0xff] }
  0xb7   : > { %3440 = vmatmul.mubr.msk.f32.gmra.mrb[14].mxu0 %vm682_vm1, %v680_v19  ;;  %3466 = vmatmul.mubr.msk.f32.gmra.mrb[14].mxu1 %vm682_vm1, %v680_v19  ;;  %v1032_v19 = vld [vmem:[%s4830_s4 + $0x18] sm:$0xff] }
 0x16e   : > { %v3420_v22 = vpop.f32.mrb[0].mxu0  ;;  %v3446_v23 = vpop.f32.mrb[0].mxu1 }
 0x16f   : > { %v801_v24 = vpop.f32.mrb[1].mxu0  ;;  %v950_v25 = vpop.f32.mrb[1].mxu1 }
 0x170   : > { %v3652_v26 = vpack.i.bf16 %v3420_v22, %v801_v24  ;;  %v3657_v20 = vpack.i.bf16 %v3446_v23, %v950_v25 }
 0x172   : > { %v3449_v27 = vpop.f32.mrb[2].mxu1  ;;  %3653 = vrot.lane.b32.xlu0 %v3652_v26, %s3775_s30  ;;  %v3423_v28 = vpop.f32.mrb[2].mxu0 }
 0x173   : > { %v811_v29 = vpop.f32.mrb[3].mxu0  ;;  %v960_v30 = vpop.f32.mrb[3].mxu1 }
 0x174   : > { %v3662_v31 = vpack.i.bf16 %v3423_v28, %v811_v29  ;;  %v3667_v32 = vpack.i.bf16 %v3449_v27, %v960_v30 }
 0x176   : > { %3658 = vrot.lane.b32.xlu0 %v3657_v20, %s3776_s17  ;;  %3663 = vrot.lane.b32.xlu1 %v3662_v31, %s3775_s30  ;;  %v3426_v33 = vpop.f32.mrb[4].mxu0  ;;  %v3452_v34 = vpop.f32.mrb[4].mxu1 }
 0x177   : > { %v821_v35 = vpop.f32.mrb[5].mxu0  ;;  %v970_v36 = vpop.f32.mrb[5].mxu1 }
 0x178   : > { %v3672_v37 = vpack.i.bf16 %v3426_v33, %v821_v35  ;;  %v3677_v38 = vpack.i.bf16 %v3452_v34, %v970_v36  ;;  %v1033_v34 = vld [vmem:[%s4830_s4 + $0x20] sm:$0xff]  ;;  %v1034_v35 = vld [vmem:[%s4830_s4 + $0x28] sm:$0xff] }
 0x17a   : > { %3668 = vrot.lane.b32.xlu1 %v3667_v32, %s3776_s17  ;;  %3673 = vrot.lane.b32.xlu0 %v3672_v37, %s3775_s30  ;;  %v3429_v39 = vpop.f32.mrb[6].mxu0  ;;  %v3455_v40 = vpop.f32.mrb[6].mxu1 }
 0x17b   : > { %v831_v41 = vpop.f32.mrb[7].mxu0  ;;  %v980_v42 = vpop.f32.mrb[7].mxu1 }
 0x17c   : > { %v3682_v43 = vpack.i.bf16 %v3429_v39, %v831_v41  ;;  %v3687_v44 = vpack.i.bf16 %v3455_v40, %v980_v42 }
 0x17e   : > { %3678 = vrot.lane.b32.xlu0 %v3677_v38, %s3776_s17  ;;  %3683 = vrot.lane.b32.xlu1 %v3682_v43, %s3775_s30  ;;  %v3432_v45 = vpop.f32.mrb[8].mxu0  ;;  %v3458_v46 = vpop.f32.mrb[8].mxu1 }
 0x17f   : > { %v841_v47 = vpop.f32.mrb[9].mxu0  ;;  %v990_v48 = vpop.f32.mrb[9].mxu1 }
 0x180   : > { %v3692_v49 = vpack.i.bf16 %v3432_v45, %v841_v47  ;;  %v3697_v50 = vpack.i.bf16 %v3458_v46, %v990_v48  ;;  %v1035_v45 = vld [vmem:[%s4830_s4 + $0x30] sm:$0xff]  ;;  %v1036_v46 = vld [vmem:[%s4830_s4 + $0x38] sm:$0xff] }
 0x182   : > { %3688 = vrot.lane.b32.xlu1 %v3687_v44, %s3776_s17  ;;  %3693 = vrot.lane.b32.xlu0 %v3692_v49, %s3775_s30  ;;  %v3435_v51 = vpop.f32.mrb[10].mxu0  ;;  %v3461_v52 = vpop.f32.mrb[10].mxu1 }
 0x183   : > { %v851_v53 = vpop.f32.mrb[11].mxu0  ;;  %v1000_v54 = vpop.f32.mrb[11].mxu1 }
 0x184   : > { %v3702_v55 = vpack.i.bf16 %v3435_v51, %v851_v53  ;;  %v3707_v56 = vpack.i.bf16 %v3461_v52, %v1000_v54 }
 0x186   : > { %3698 = vrot.lane.b32.xlu0 %v3697_v50, %s3776_s17  ;;  %3703 = vrot.lane.b32.xlu1 %v3702_v55, %s3775_s30  ;;  %v3438_v57 = vpop.f32.mrb[12].mxu0  ;;  %v3464_v58 = vpop.f32.mrb[12].mxu1 }
 0x187   : > { %v861_v59 = vpop.f32.mrb[13].mxu0  ;;  %v1010_v60 = vpop.f32.mrb[13].mxu1 }
 0x188   : > { %v3712_v61 = vpack.i.bf16 %v3438_v57, %v861_v59  ;;  %v3722_v62 = vpack.i.bf16 %v3464_v58, %v1010_v60  ;;  %v1037_v60 = vld [vmem:[%s4830_s4 + $0x40] sm:$0xff] }
 0x18a   : > { %3708 = vrot.lane.b32.xlu1 %v3707_v56, %s3776_s17  ;;  %3713 = vrot.lane.b32.xlu0 %v3712_v61, %s3775_s30  ;;  %v3441_v63 = vpop.f32.mrb[14].mxu0  ;;  %v3467_v0 = vpop.f32.mrb[14].mxu1  ;;  %v1038_v61 = vld [vmem:[%s4830_s4 + $0x48] sm:$0xff] }
 0x18b   : > { %v871_v2 = vpop.f32.mrb[15].mxu0  ;;  %v1020_v3 = vpop.f32.mrb[15].mxu1 }
 0x18c   : > { %v3717_v4 = vpack.i.bf16 %v3441_v63, %v871_v2  ;;  %v3727_v5 = vpack.i.bf16 %v3467_v0, %v1020_v3 }
 0x18e   : > { %3723 = vrot.lane.b32.xlu0 %v3722_v62, %s3776_s17  ;;  %3718 = vrot.lane.b32.xlu1 %v3717_v4, %s3775_s30 }
 0x192   : > { %3728 = vrot.lane.b32.xlu1 %v3727_v5, %s3776_s17 }
 0x1e4   : > { %v3654_v6 = vpop.permute.xlu0 %3653 }
 0x1e5   : > { %v3656_v7 = vunpack.i.h.bf16 %v3654_v6  ;;  %v3655_v8 = vunpack.i.l.bf16 %v3654_v6 }
 0x1e7   : > { %v1175_v15 = vsel %vm1173_vm3, %v1030_v10, %v3656_v7  ;;  %v1174_v16 = vsel %vm1173_vm3, %v1029_v9, %v3655_v8  ;;  %v1039_v7 = vld [vmem:[%s4830_s4 + $0x50] sm:$0xff]  ;;  %v1040_v8 = vld [vmem:[%s4830_s4 + $0x58] sm:$0xff] }
 0x1e8   : > { %v3664_v11 = vpop.permute.xlu1 %3663  ;;  %v3659_v12 = vpop.permute.xlu0 %3658 }
 0x1e9   : > { %v3661_v13 = vunpack.i.h.bf16 %v3659_v12  ;;  %v3660_v14 = vunpack.i.l.bf16 %v3659_v12  ;;  %v3666_v17 = vunpack.i.h.bf16 %v3664_v11  ;;  %v3665_v18 = vunpack.i.l.bf16 %v3664_v11 }
 0x1eb   : > { %v1191_v22 = vsel %vm1190_vm4, %v1174_v16, %v3660_v14  ;;  %v1192_v23 = vsel %vm1190_vm4, %v1175_v15, %v3661_v13  ;;  %v1177_v28 = vsel %vm1173_vm3, %v1032_v19, %v3666_v17  ;;  %v1176_v29 = vsel %vm1173_vm3, %v1031_v21, %v3665_v18 }
 0x1ec   : > { %v1207_v24 = vpack.c.bf16 %v1192_v23, %v1191_v22  ;;  %v3669_v25 = vpop.permute.xlu1 %3668  ;;  %v3674_v26 = vpop.permute.xlu0 %3673  ;;  %v1041_v23 = vld [vmem:[%s4830_s4 + $0x60] sm:$0xff] }
 0x1ed   : > { %v3671_v20 = vunpack.i.h.bf16 %v3669_v25  ;;  %v3670_v27 = vunpack.i.l.bf16 %v3669_v25  ;;  %v3676_v30 = vunpack.i.h.bf16 %v3674_v26  ;;  %v3675_v31 = vunpack.i.l.bf16 %v3674_v26 }
 0x1ee   : > { %1216 = vst.msk [vmem:[#allocation2] sm:$0xff] %vm1215_vm5, %v1207_v24  ;;  %v1042_v24 = vld [vmem:[%s4830_s4 + $0x68] sm:$0xff] }
 0x1ef   : > { %v1193_v32 = vsel %vm1190_vm4, %v1176_v29, %v3670_v27  ;;  %v1194_v33 = vsel %vm1190_vm4, %v1177_v28, %v3671_v20  ;;  %v1179_v41 = vsel %vm1173_vm3, %v1034_v35, %v3676_v30  ;;  %v1178_v42 = vsel %vm1173_vm3, %v1033_v34, %v3675_v31  ;;  %v1044_v34 = vld [vmem:[%s4830_s4 + $0x78] sm:$0xff] }
 0x1f0   : > { %v1208_v36 = vpack.c.bf16 %v1194_v33, %v1193_v32  ;;  %v3684_v37 = vpop.permute.xlu1 %3683  ;;  %v3679_v38 = vpop.permute.xlu0 %3678  ;;  %v1043_v33 = vld [vmem:[%s4830_s4 + $0x70] sm:$0xff] }
 0x1f1   : > { %v3681_v39 = vunpack.i.h.bf16 %v3679_v38  ;;  %v3680_v40 = vunpack.i.l.bf16 %v3679_v38  ;;  %v3686_v43 = vunpack.i.h.bf16 %v3684_v37  ;;  %v3685_v44 = vunpack.i.l.bf16 %v3684_v37 }
 0x1f2   : > { %1217 = vst.msk [vmem:[#allocation2 + $0x8] sm:$0xff] %vm1215_vm5, %v1208_v36 }
 0x1f3   : > { %v1195_v47 = vsel %vm1190_vm4, %v1178_v42, %v3680_v40  ;;  %v1196_v48 = vsel %vm1190_vm4, %v1179_v41, %v3681_v39  ;;  %v1181_v54 = vsel %vm1173_vm3, %v1036_v46, %v3686_v43  ;;  %v1180_v55 = vsel %vm1173_vm3, %v1035_v45, %v3685_v44 }
 0x1f4   : > { %v1209_v49 = vpack.c.bf16 %v1196_v48, %v1195_v47  ;;  %v3689_v50 = vpop.permute.xlu1 %3688  ;;  %v3694_v51 = vpop.permute.xlu0 %3693 }
 0x1f5   : > { %v3691_v52 = vunpack.i.h.bf16 %v3689_v50  ;;  %v3690_v53 = vunpack.i.l.bf16 %v3689_v50  ;;  %v3696_v56 = vunpack.i.h.bf16 %v3694_v51  ;;  %v3695_v57 = vunpack.i.l.bf16 %v3694_v51 }
 0x1f6   : > { %1218 = vst.msk [vmem:[#allocation2 + $0x10] sm:$0xff] %vm1215_vm5, %v1209_v49 }
 0x1f7   : > { %v1197_v58 = vsel %vm1190_vm4, %v1180_v55, %v3690_v53  ;;  %v1198_v59 = vsel %vm1190_vm4, %v1181_v54, %v3691_v52  ;;  %v1183_v3 = vsel %vm1173_vm3, %v1038_v61, %v3696_v56  ;;  %v1182_v4 = vsel %vm1173_vm3, %v1037_v60, %v3695_v57 }
 0x1f8   : > { %v1210_v62 = vpack.c.bf16 %v1198_v59, %v1197_v58  ;;  %v3704_v63 = vpop.permute.xlu1 %3703  ;;  %v3699_v0 = vpop.permute.xlu0 %3698 }
 0x1f9   : > { %v3701_v1 = vunpack.i.h.bf16 %v3699_v0  ;;  %v3700_v2 = vunpack.i.l.bf16 %v3699_v0  ;;  %v3706_v5 = vunpack.i.h.bf16 %v3704_v63  ;;  %v3705_v6 = vunpack.i.l.bf16 %v3704_v63 }
 0x1fa   : > { %1219 = vst.msk [vmem:[#allocation2 + $0x18] sm:$0xff] %vm1215_vm5, %v1210_v62 }
 0x1fb   : > { %v1199_v9 = vsel %vm1190_vm4, %v1182_v4, %v3700_v2  ;;  %v1200_v10 = vsel %vm1190_vm4, %v1183_v3, %v3701_v1  ;;  %v1185_v16 = vsel %vm1173_vm3, %v1040_v8, %v3706_v5  ;;  %v1184_v17 = vsel %vm1173_vm3, %v1039_v7, %v3705_v6 }
 0x1fc   : > { %v1211_v11 = vpack.c.bf16 %v1200_v10, %v1199_v9  ;;  %v3709_v12 = vpop.permute.xlu1 %3708  ;;  %v3714_v13 = vpop.permute.xlu0 %3713 }
 0x1fd   : > { %v3711_v14 = vunpack.i.h.bf16 %v3709_v12  ;;  %v3710_v15 = vunpack.i.l.bf16 %v3709_v12  ;;  %v3716_v18 = vunpack.i.h.bf16 %v3714_v13  ;;  %v3715_v21 = vunpack.i.l.bf16 %v3714_v13 }
 0x1fe   : > { %1220 = vst.msk [vmem:[#allocation2 + $0x20] sm:$0xff] %vm1215_vm5, %v1211_v11 }
 0x1ff   : > { %v1201_v19 = vsel %vm1190_vm4, %v1184_v17, %v3710_v15  ;;  %v1202_v22 = vsel %vm1190_vm4, %v1185_v16, %v3711_v14  ;;  %v1187_v29 = vsel %vm1173_vm3, %v1042_v24, %v3716_v18  ;;  %v1186_v30 = vsel %vm1173_vm3, %v1041_v23, %v3715_v21 }
 0x200   : > { %v1212_v25 = vpack.c.bf16 %v1202_v22, %v1201_v19  ;;  %v3719_v26 = vpop.permute.xlu1 %3718  ;;  %v3724_v20 = vpop.permute.xlu0 %3723 }
 0x201   : > { %v3726_v27 = vunpack.i.h.bf16 %v3724_v20  ;;  %v3725_v28 = vunpack.i.l.bf16 %v3724_v20  ;;  %v3721_v31 = vunpack.i.h.bf16 %v3719_v26  ;;  %v3720_v32 = vunpack.i.l.bf16 %v3719_v26 }
 0x202   : > { %1221 = vst.msk [vmem:[#allocation2 + $0x28] sm:$0xff] %vm1215_vm5, %v1212_v25 }
 0x203   : > { %v1203_v35 = vsel %vm1190_vm4, %v1186_v30, %v3725_v28  ;;  %v1204_v36 = vsel %vm1190_vm4, %v1187_v29, %v3726_v27  ;;  %v1189_v41 = vsel %vm1173_vm3, %v1044_v34, %v3721_v31  ;;  %v1188_v42 = vsel %vm1173_vm3, %v1043_v33, %v3720_v32 }
 0x204   : > { %v1213_v37 = vpack.c.bf16 %v1204_v36, %v1203_v35  ;;  %v3729_v38 = vpop.permute.xlu1 %3728 }
 0x205   : > { %v3731_v39 = vunpack.i.h.bf16 %v3729_v38  ;;  %v3730_v40 = vunpack.i.l.bf16 %v3729_v38 }
 0x206   : > { %1222 = vst.msk [vmem:[#allocation2 + $0x30] sm:$0xff] %vm1215_vm5, %v1213_v37 }
 0x207   : > { %v1205_v43 = vsel %vm1190_vm4, %v1188_v42, %v3730_v40  ;;  %v1206_v44 = vsel %vm1190_vm4, %v1189_v41, %v3731_v39 }
 0x208   : > { %v1214_v45 = vpack.c.bf16 %v1206_v44, %v1205_v43 }
 0x20a   : > { %1223 = vst.msk [vmem:[#allocation2 + $0x38] sm:$0xff] %vm1215_vm5, %v1214_v45 }
 0x20b PF: > { %v1257_v46 = vld [vmem:[%s3891_s16] sm:$0xff]  ;;  %v3778_v48 = vmov 0   ;;  %v1258_v49 = vld [vmem:[%s3891_s16 + $0x8] sm:$0xff]  ;;  %v1259_v51 = vld [vmem:[%s3891_s16 + $0x10] sm:$0xff]  ;;  %v4845_v24 = vlaneseq  ;;  %v4843_v29 = vmov 1.0|1.0  }
 0x20c   : > { %v1241_v47 = vld [vmem:[%s3886_s28] sm:$0xff]  ;;  %3733 = vset.pattern.permute.xlu1 %v3778_v48  ;;  %3732 = vset.pattern.permute.xlu0 %v3778_v48  ;;  %v1242_v50 = vld [vmem:[%s3886_s28 + $0x8] sm:$0xff]  ;;  %v1260_v52 = vld [vmem:[%s3891_s16 + $0x18] sm:$0xff]  ;;  %s3781_s26 = smov 120   ;;  %s3782_s18 = smov 2  }
 0x20d   : > { %1277 = vperm.xlu0 %3732, %v1257_v46   ;;  %1381 = vperm.xlu1 %3733, %v1241_v47   ;;  %v1561_v53 = vld [vmem:[#allocation2] sm:$0xff]  ;;  %v1243_v54 = vld [vmem:[%s3886_s28 + $0x10] sm:$0xff]  ;;  %v1244_v55 = vld [vmem:[%s3886_s28 + $0x18] sm:$0xff]  ;;  %v4175_v20 = vand.u32 127, %v4845_v24  ;;  %s3256_s20 = sshll.u32 %s3870_s19, 7  ;;  %p3297_p6 = scmp.ne.s32.totalorder %s3870_s19, 3 }
 0x20e   : > { %3468 = vmatprep.subr.bf16.mxu0 %v1561_v53  ;;  %v1562_v56 = vld [vmem:[#allocation2 + $0x8] sm:$0xff]  ;;  %3500 = vmatprep.subr.bf16.mxu1 %v1561_v53  ;;  %v1563_v57 = vld [vmem:[#allocation2 + $0x10] sm:$0xff]  ;;  %v1261_v58 = vld [vmem:[%s3891_s16 + $0x20] sm:$0xff] }
 0x20f   : > { %3469 = vmatpush3.bf16.msra.mxu0 %v1561_v53  ;;  %3501 = vmatpush3.bf16.msra.mxu1 %v1561_v53  ;;  %v1262_v59 = vld [vmem:[%s3891_s16 + $0x28] sm:$0xff]  ;;  %v1564_v60 = vld [vmem:[#allocation2 + $0x18] sm:$0xff]  ;;  %v1245_v61 = vld [vmem:[%s3886_s28 + $0x20] sm:$0xff] }
 0x210   : > { %3470 = vmatprep.subr.bf16.mxu0 %v1562_v56  ;;  %3502 = vmatprep.subr.bf16.mxu1 %v1562_v56  ;;  %v1246_v62 = vld [vmem:[%s3886_s28 + $0x28] sm:$0xff]  ;;  %v1565_v63 = vld [vmem:[#allocation2 + $0x20] sm:$0xff]  ;;  %v1263_v0 = vld [vmem:[%s3891_s16 + $0x30] sm:$0xff] }
 0x211   : > { %1280 = vperm.xlu0 %3732, %v1258_v49   ;;  %1384 = vperm.xlu1 %3733, %v1242_v50   ;;  %v1264_v1 = vld [vmem:[%s3891_s16 + $0x38] sm:$0xff]  ;;  %v1566_v2 = vld [vmem:[#allocation2 + $0x28] sm:$0xff]  ;;  %v1247_v3 = vld [vmem:[%s3886_s28 + $0x30] sm:$0xff] }
 0x212   : > { %v1248_v4 = vld [vmem:[%s3886_s28 + $0x38] sm:$0xff]  ;;  %v1567_v5 = vld [vmem:[#allocation2 + $0x30] sm:$0xff]  ;;  %v1265_v6 = vld [vmem:[%s3891_s16 + $0x40] sm:$0xff] }
 0x213   : > { %3471 = vmatpush3.bf16.msra.mxu0 %v1562_v56  ;;  %3503 = vmatpush3.bf16.msra.mxu1 %v1562_v56  ;;  %v1266_v7 = vld [vmem:[%s3891_s16 + $0x48] sm:$0xff]  ;;  %v1568_v8 = vld [vmem:[#allocation2 + $0x38] sm:$0xff]  ;;  %v1249_v9 = vld [vmem:[%s3886_s28 + $0x40] sm:$0xff] }
 0x214   : > { %3472 = vmatprep.subr.bf16.mxu0 %v1563_v57  ;;  %3504 = vmatprep.subr.bf16.mxu1 %v1563_v57  ;;  %v1250_v10 = vld [vmem:[%s3886_s28 + $0x48] sm:$0xff]  ;;  %v1267_v11 = vld [vmem:[%s3891_s16 + $0x50] sm:$0xff]  ;;  %v1268_v12 = vld [vmem:[%s3891_s16 + $0x58] sm:$0xff] }
 0x215   : > { %1283 = vperm.xlu0 %3732, %v1259_v51   ;;  %1286 = vperm.xlu1 %3733, %v1260_v52   ;;  %v1251_v13 = vld [vmem:[%s3886_s28 + $0x50] sm:$0xff]  ;;  %v1252_v14 = vld [vmem:[%s3886_s28 + $0x58] sm:$0xff]  ;;  %v1269_v15 = vld [vmem:[%s3891_s16 + $0x60] sm:$0xff] }
 0x216   : > { %v1270_v16 = vld [vmem:[%s3891_s16 + $0x68] sm:$0xff]  ;;  %v1253_v17 = vld [vmem:[%s3886_s28 + $0x60] sm:$0xff]  ;;  %v1271_v21 = vld [vmem:[%s3891_s16 + $0x70] sm:$0xff] }
 0x217   : > { %3473 = vmatpush3.bf16.msra.mxu0 %v1563_v57  ;;  %3505 = vmatpush3.bf16.msra.mxu1 %v1563_v57  ;;  %v1254_v18 = vld [vmem:[%s3886_s28 + $0x68] sm:$0xff]  ;;  %v1272_v19 = vld [vmem:[%s3891_s16 + $0x78] sm:$0xff]  ;;  %v1255_v22 = vld [vmem:[%s3886_s28 + $0x70] sm:$0xff]  ;;  %s3783_s16 = smov 126  }
 0x218   : > { %3474 = vmatprep.subr.bf16.mxu0 %v1564_v60  ;;  %3506 = vmatprep.subr.bf16.mxu1 %v1564_v60  ;;  %v1256_v23 = vld [vmem:[%s3886_s28 + $0x78] sm:$0xff]  ;;  %s3780_s28 = smov 127  }
 0x219   : > { %1387 = vperm.xlu0 %3732, %v1243_v54   ;;  %1390 = vperm.xlu1 %3733, %v1244_v55  }
 0x21b   : > { %3475 = vmatpush3.bf16.msra.mxu0 %v1564_v60  ;;  %3507 = vmatpush3.bf16.msra.mxu1 %v1564_v60 }
 0x21c   : > { %3476 = vmatprep.subr.bf16.mxu0 %v1565_v63  ;;  %3508 = vmatprep.subr.bf16.mxu1 %v1565_v63 }
 0x21d   : > { %1289 = vperm.xlu0 %3732, %v1261_v58   ;;  %1292 = vperm.xlu1 %3733, %v1262_v59  }
 0x21f   : > { %3477 = vmatpush3.bf16.msra.mxu0 %v1565_v63  ;;  %3509 = vmatpush3.bf16.msra.mxu1 %v1565_v63 }
 0x220   : > { %3478 = vmatprep.subr.bf16.mxu0 %v1566_v2  ;;  %3510 = vmatprep.subr.bf16.mxu1 %v1566_v2 }
 0x221   : > { %1393 = vperm.xlu0 %3732, %v1245_v61   ;;  %1396 = vperm.xlu1 %3733, %v1246_v62  }
 0x223   : > { %3479 = vmatpush3.bf16.msra.mxu0 %v1566_v2  ;;  %3511 = vmatpush3.bf16.msra.mxu1 %v1566_v2 }
 0x224   : > { %3480 = vmatprep.subr.bf16.mxu0 %v1567_v5  ;;  %3512 = vmatprep.subr.bf16.mxu1 %v1567_v5 }
 0x225   : > { %1295 = vperm.xlu0 %3732, %v1263_v0   ;;  %1298 = vperm.xlu1 %3733, %v1264_v1  }
 0x227   : > { %3481 = vmatpush3.bf16.msra.mxu0 %v1567_v5  ;;  %3513 = vmatpush3.bf16.msra.mxu1 %v1567_v5 }
 0x228   : > { %3482 = vmatprep.subr.bf16.mxu0 %v1568_v8  ;;  %3514 = vmatprep.subr.bf16.mxu1 %v1568_v8 }
 0x229   : > { %1399 = vperm.xlu0 %3732, %v1247_v3   ;;  %1402 = vperm.xlu1 %3733, %v1248_v4  }
 0x22b   : > { %3483 = vmatpush3.bf16.msra.mxu0 %v1568_v8  ;;  %3515 = vmatpush3.bf16.msra.mxu1 %v1568_v8 }
 0x22d   : > { %1301 = vperm.xlu0 %3732, %v1265_v6   ;;  %1304 = vperm.xlu1 %3733, %v1266_v7  }
 0x231   : > { %1405 = vperm.xlu0 %3732, %v1249_v9   ;;  %1408 = vperm.xlu1 %3733, %v1250_v10  }
 0x235   : > { %1307 = vperm.xlu0 %3732, %v1267_v11   ;;  %1310 = vperm.xlu1 %3733, %v1268_v12  }
 0x239   : > { %1411 = vperm.xlu0 %3732, %v1251_v13   ;;  %1414 = vperm.xlu1 %3733, %v1252_v14  }
 0x23d   : > { %1313 = vperm.xlu0 %3732, %v1269_v15   ;;  %1316 = vperm.xlu1 %3733, %v1270_v16  }
 0x241   : > { %1417 = vperm.xlu0 %3732, %v1253_v17   ;;  %1420 = vperm.xlu1 %3733, %v1254_v18  }
 0x245   : > { %1319 = vperm.xlu0 %3732, %v1271_v21   ;;  %1322 = vperm.xlu1 %3733, %v1272_v19  }
 0x249   : > { %1423 = vperm.xlu0 %3732, %v1255_v22   ;;  %1426 = vperm.xlu1 %3733, %v1256_v23  }
 0x28c   : > { %v1278_v25 = vpop.permute.xlu0 %1277  ;;  %v1382_v26 = vpop.permute.xlu1 %1381 }
 0x28d   : > { %vm1324_vm6 = vcmp.eq.s32.totalorder %v4175_v20, %v1278_v25  ;;  %vm1428_vm10 = vcmp.eq.s32.totalorder %v4175_v20, %v1382_v26 }
 0x290   : > { %v1281_v27 = vpop.permute.xlu0 %1280  ;;  %v1385_v28 = vpop.permute.xlu1 %1384 }
 0x291   : > { %vm1325_vm7 = vcmp.eq.s32.totalorder %v4175_v20, %v1281_v27  ;;  %vm1429_vm8 = vcmp.eq.s32.totalorder %v4175_v20, %v1385_v28 }
 0x292   : > { %vm3188_vm9 = vmpackc.low %vm1325_vm7, %vm1324_vm6 }
 0x293   : > { %3484 = vmatprep.mubr.msk.bf16.mxu0 %vm3188_vm9, %v4843_v29  ;;  %vm3204_vm11 = vmpackc.low %vm1429_vm8, %vm1428_vm10 }
 0x294   : > { %3516 = vmatprep.mubr.msk.bf16.mxu1 %vm3204_vm11, %v4843_v29  ;;  %v1284_v30 = vpop.permute.xlu0 %1283  ;;  %v1287_v31 = vpop.permute.xlu1 %1286 }
 0x295   : > { %vm1326_vm12 = vcmp.eq.s32.totalorder %v4175_v20, %v1284_v30  ;;  %vm1327_vm13 = vcmp.eq.s32.totalorder %v4175_v20, %v1287_v31 }
 0x296   : > { %vm3190_vm14 = vmpackc.low %vm1327_vm13, %vm1326_vm12 }
 0x297   : > { %3485 = vmatmul.mubr.msk.bf16.vlgmr.msra.gmra.mrb[0].mxu0 %vm3190_vm14, %v4843_v29 }
 0x298   : > { %v1388_v32 = vpop.permute.xlu0 %1387  ;;  %v1391_v33 = vpop.permute.xlu1 %1390 }
 0x299   : > { %vm1430_vm15 = vcmp.eq.s32.totalorder %v4175_v20, %v1388_v32  ;;  %vm1431_vm0 = vcmp.eq.s32.totalorder %v4175_v20, %v1391_v33 }
 0x29a   : > { %vm3206_vm1 = vmpackc.low %vm1431_vm0, %vm1430_vm15 }
 0x29b   : > { %3517 = vmatmul.mubr.msk.bf16.vlgmr.msra.gmra.mrb[0].mxu1 %vm3206_vm1, %v4843_v29 }
 0x29c   : > { %v1290_v34 = vpop.permute.xlu0 %1289  ;;  %v1293_v35 = vpop.permute.xlu1 %1292 }
 0x29d   : > { %vm1328_vm2 = vcmp.eq.s32.totalorder %v4175_v20, %v1290_v34  ;;  %vm1329_vm3 = vcmp.eq.s32.totalorder %v4175_v20, %v1293_v35 }
 0x29e   : > { %vm3192_vm4 = vmpackc.low %vm1329_vm3, %vm1328_vm2 }
 0x29f   : > { %3488 = vmatprep.mubr.msk.bf16.mxu0 %vm3192_vm4, %v4843_v29 }
 0x2a0   : > { %v1394_v36 = vpop.permute.xlu0 %1393  ;;  %v1397_v37 = vpop.permute.xlu1 %1396 }
 0x2a1   : > { %vm1432_vm5 = vcmp.eq.s32.totalorder %v4175_v20, %v1394_v36  ;;  %vm1433_vm6 = vcmp.eq.s32.totalorder %v4175_v20, %v1397_v37 }
 0x2a2   : > { %vm3208_vm7 = vmpackc.low %vm1433_vm6, %vm1432_vm5 }
 0x2a3   : > { %3520 = vmatprep.mubr.msk.bf16.mxu1 %vm3208_vm7, %v4843_v29 }
 0x2a4   : > { %v1296_v38 = vpop.permute.xlu0 %1295  ;;  %v1299_v39 = vpop.permute.xlu1 %1298 }
 0x2a5   : > { %vm1330_vm8 = vcmp.eq.s32.totalorder %v4175_v20, %v1296_v38  ;;  %vm1331_vm9 = vcmp.eq.s32.totalorder %v4175_v20, %v1299_v39 }
 0x2a6   : > { %vm3194_vm10 = vmpackc.low %vm1331_vm9, %vm1330_vm8 }
 0x2a7   : > { %3489 = vmatmul.mubr.msk.bf16.gmra.mrb[4].mxu0 %vm3194_vm10, %v4843_v29 }
 0x2a8   : > { %v1400_v40 = vpop.permute.xlu0 %1399  ;;  %v1403_v41 = vpop.permute.xlu1 %1402 }
 0x2a9   : > { %vm1434_vm11 = vcmp.eq.s32.totalorder %v4175_v20, %v1400_v40  ;;  %vm1435_vm12 = vcmp.eq.s32.totalorder %v4175_v20, %v1403_v41 }
 0x2aa   : > { %vm3210_vm13 = vmpackc.low %vm1435_vm12, %vm1434_vm11 }
 0x2ab   : > { %3521 = vmatmul.mubr.msk.bf16.gmra.mrb[4].mxu1 %vm3210_vm13, %v4843_v29 }
 0x2ac   : > { %v1302_v42 = vpop.permute.xlu0 %1301  ;;  %v1305_v43 = vpop.permute.xlu1 %1304 }
 0x2ad   : > { %vm1332_vm14 = vcmp.eq.s32.totalorder %v4175_v20, %v1302_v42  ;;  %vm1333_vm15 = vcmp.eq.s32.totalorder %v4175_v20, %v1305_v43 }
 0x2ae   : > { %vm3196_vm0 = vmpackc.low %vm1333_vm15, %vm1332_vm14 }
 0x2af   : > { %3492 = vmatprep.mubr.msk.bf16.mxu0 %vm3196_vm0, %v4843_v29 }
 0x2b0   : > { %v1406_v44 = vpop.permute.xlu0 %1405  ;;  %v1409_v45 = vpop.permute.xlu1 %1408 }
 0x2b1   : > { %vm1436_vm1 = vcmp.eq.s32.totalorder %v4175_v20, %v1406_v44  ;;  %vm1437_vm2 = vcmp.eq.s32.totalorder %v4175_v20, %v1409_v45 }
 0x2b2   : > { %vm3212_vm3 = vmpackc.low %vm1437_vm2, %vm1436_vm1 }
 0x2b3   : > { %3524 = vmatprep.mubr.msk.bf16.mxu1 %vm3212_vm3, %v4843_v29 }
 0x2b4   : > { %v1308_v46 = vpop.permute.xlu0 %1307  ;;  %v1311_v47 = vpop.permute.xlu1 %1310 }
 0x2b5   : > { %vm1334_vm4 = vcmp.eq.s32.totalorder %v4175_v20, %v1308_v46  ;;  %vm1335_vm5 = vcmp.eq.s32.totalorder %v4175_v20, %v1311_v47 }
 0x2b6   : > { %vm3198_vm6 = vmpackc.low %vm1335_vm5, %vm1334_vm4 }
 0x2b7   : > { %3493 = vmatmul.mubr.msk.bf16.gmra.mrb[8].mxu0 %vm3198_vm6, %v4843_v29 }
 0x2b8   : > { %v1412_v48 = vpop.permute.xlu0 %1411  ;;  %v1415_v49 = vpop.permute.xlu1 %1414 }
 0x2b9   : > { %vm1438_vm7 = vcmp.eq.s32.totalorder %v4175_v20, %v1412_v48  ;;  %vm1439_vm8 = vcmp.eq.s32.totalorder %v4175_v20, %v1415_v49 }
 0x2ba   : > { %vm3214_vm9 = vmpackc.low %vm1439_vm8, %vm1438_vm7 }
 0x2bb   : > { %3525 = vmatmul.mubr.msk.bf16.gmra.mrb[8].mxu1 %vm3214_vm9, %v4843_v29 }
 0x2bc   : > { %v1314_v50 = vpop.permute.xlu0 %1313  ;;  %v1317_v51 = vpop.permute.xlu1 %1316 }
 0x2bd   : > { %vm1336_vm10 = vcmp.eq.s32.totalorder %v4175_v20, %v1314_v50  ;;  %vm1337_vm11 = vcmp.eq.s32.totalorder %v4175_v20, %v1317_v51 }
 0x2be   : > { %vm3200_vm12 = vmpackc.low %vm1337_vm11, %vm1336_vm10 }
 0x2bf   : > { %3496 = vmatprep.mubr.msk.bf16.mxu0 %vm3200_vm12, %v4843_v29 }
 0x2c0   : > { %v1418_v52 = vpop.permute.xlu0 %1417  ;;  %v1421_v53 = vpop.permute.xlu1 %1420 }
 0x2c1   : > { %vm1440_vm13 = vcmp.eq.s32.totalorder %v4175_v20, %v1418_v52  ;;  %vm1441_vm14 = vcmp.eq.s32.totalorder %v4175_v20, %v1421_v53 }
 0x2c2   : > { %vm3216_vm15 = vmpackc.low %vm1441_vm14, %vm1440_vm13 }
 0x2c3   : > { %3528 = vmatprep.mubr.msk.bf16.mxu1 %vm3216_vm15, %v4843_v29 }
 0x2c4   : > { %v1320_v54 = vpop.permute.xlu0 %1319  ;;  %v1323_v55 = vpop.permute.xlu1 %1322 }
 0x2c5   : > { %vm1338_vm0 = vcmp.eq.s32.totalorder %v4175_v20, %v1320_v54  ;;  %vm1339_vm1 = vcmp.eq.s32.totalorder %v4175_v20, %v1323_v55 }
 0x2c6   : > { %vm3202_vm2 = vmpackc.low %vm1339_vm1, %vm1338_vm0 }
 0x2c7   : > { %3497 = vmatmul.mubr.msk.bf16.gmra.mrb[12].mxu0 %vm3202_vm2, %v4843_v29 }
 0x2c8   : > { %v1424_v56 = vpop.permute.xlu0 %1423  ;;  %v1427_v57 = vpop.permute.xlu1 %1426 }
 0x2c9   : > { %vm1442_vm3 = vcmp.eq.s32.totalorder %v4175_v20, %v1424_v56  ;;  %vm1443_vm4 = vcmp.eq.s32.totalorder %v4175_v20, %v1427_v57 }
 0x2ca   : > { %vm3218_vm5 = vmpackc.low %vm1443_vm4, %vm1442_vm3 }
 0x2cb   : > { %3529 = vmatmul.mubr.msk.bf16.gmra.mrb[12].mxu1 %vm3218_vm5, %v4843_v29 }
 0x36a   : > { %v4225_v58 = vpop.f32.mrb[0].mxu0 }
 0x36b   : > { %v4227_v59 = vpop.f32.mrb[1].mxu0 }
 0x36c   : > { %v4229_v60 = vpop.f32.mrb[2].mxu0 }
 0x36d   : > { %v4231_v61 = vpop.f32.mrb[3].mxu0 }
 0x36e   : > { %v4233_v62 = vpop.f32.mrb[0].mxu1 }
 0x36f   : > { %v1765_v63 = vsub.f32 %v4225_v58, %v4233_v62  ;;  %v4237_v0 = vpop.f32.mrb[1].mxu1 }
 0x370   : > { %v1763_v1 = vsub.f32 %v4227_v59, %v4237_v0  ;;  %v4241_v2 = vpop.f32.mrb[2].mxu1 }
 0x371   : > { %v1766_v3 = vsub.f32 %v4229_v60, %v4241_v2  ;;  %v4245_v4 = vpop.f32.mrb[3].mxu1  ;;  %v4255_v8 = vmul.f32 %v1765_v63, %v1765_v63 }
 0x372   : > { %v4247_v5 = vmul.f32 %v1763_v1, %v1763_v1  ;;  %v1764_v6 = vsub.f32 %v4231_v61, %v4245_v4 }
 0x373   : > { %v4259_v9 = vmul.f32 %v1766_v3, %v1766_v3  ;;  %v2209_v3 = vld [vmem:[%s4837_s11] sm:$0xff] }
 0x374   : > { %v4251_v7 = vmul.f32 %v1764_v6, %v1764_v6  ;;  %1811 = vrot.lane.b32.xlu0 %v4247_v5, %s3780_s28  ;;  %3532 = vmatprep.subr.mxu0 %v2209_v3 }
 0x375   : > { %3533 = vmatpush3.msra.mxu0 %v2209_v3 }
 0x376   : > { %1813 = vrot.lane.b32.xlu1 %v4251_v7, %s3780_s28 }
 0x378   : > { %1815 = vrot.lane.b32.xlu0 %v4255_v8, %s3780_s28 }
 0x37a   : > { %1817 = vrot.lane.b32.xlu1 %v4259_v9, %s3780_s28  ;;  %v4265_v10 = vpop.f32.mrb[4].mxu0 }
 0x37b   : > { %v4267_v11 = vpop.f32.mrb[5].mxu0 }
 0x37c   : > { %v4269_v12 = vpop.f32.mrb[6].mxu0 }
 0x37d   : > { %v4271_v13 = vpop.f32.mrb[7].mxu0 }
 0x37e   : > { %v4273_v14 = vpop.f32.mrb[4].mxu1 }
 0x37f   : > { %v1769_v15 = vsub.f32 %v4265_v10, %v4273_v14  ;;  %v4277_v16 = vpop.f32.mrb[5].mxu1 }
 0x380   : > { %v1767_v17 = vsub.f32 %v4267_v11, %v4277_v16  ;;  %v4281_v18 = vpop.f32.mrb[6].mxu1 }
 0x381   : > { %v1770_v21 = vsub.f32 %v4269_v12, %v4281_v18  ;;  %v4285_v19 = vpop.f32.mrb[7].mxu1  ;;  %v4295_v26 = vmul.f32 %v1769_v15, %v1769_v15 }
 0x382   : > { %v4287_v22 = vmul.f32 %v1767_v17, %v1767_v17  ;;  %v1768_v23 = vsub.f32 %v4271_v13, %v4285_v19 }
 0x383   : > { %v4299_v20 = vmul.f32 %v1770_v21, %v1770_v21 }
 0x384   : > { %v4291_v25 = vmul.f32 %v1768_v23, %v1768_v23  ;;  %1819 = vrot.lane.b32.xlu0 %v4287_v22, %s3780_s28 }
 0x386   : > { %1821 = vrot.lane.b32.xlu1 %v4291_v25, %s3780_s28 }
 0x388   : > { %1823 = vrot.lane.b32.xlu0 %v4295_v26, %s3780_s28 }
 0x38a   : > { %1825 = vrot.lane.b32.xlu1 %v4299_v20, %s3780_s28  ;;  %v4305_v27 = vpop.f32.mrb[8].mxu0 }
 0x38b   : > { %v4307_v28 = vpop.f32.mrb[9].mxu0 }
 0x38c   : > { %v4309_v30 = vpop.f32.mrb[10].mxu0 }
 0x38d   : > { %v4311_v31 = vpop.f32.mrb[11].mxu0 }
 0x38e   : > { %v4313_v32 = vpop.f32.mrb[8].mxu1 }
 0x38f   : > { %v1773_v33 = vsub.f32 %v4305_v27, %v4313_v32  ;;  %v4317_v34 = vpop.f32.mrb[9].mxu1 }
 0x390   : > { %v1771_v35 = vsub.f32 %v4307_v28, %v4317_v34  ;;  %v4321_v36 = vpop.f32.mrb[10].mxu1 }
 0x391   : > { %v1774_v37 = vsub.f32 %v4309_v30, %v4321_v36  ;;  %v4325_v38 = vpop.f32.mrb[11].mxu1  ;;  %v4335_v42 = vmul.f32 %v1773_v33, %v1773_v33 }
 0x392   : > { %v4327_v39 = vmul.f32 %v1771_v35, %v1771_v35  ;;  %v1772_v40 = vsub.f32 %v4311_v31, %v4325_v38 }
 0x393   : > { %v4339_v43 = vmul.f32 %v1774_v37, %v1774_v37 }
 0x394   : > { %v4331_v41 = vmul.f32 %v1772_v40, %v1772_v40  ;;  %1827 = vrot.lane.b32.xlu0 %v4327_v39, %s3780_s28 }
 0x396   : > { %1829 = vrot.lane.b32.xlu1 %v4331_v41, %s3780_s28 }
 0x398   : > { %1831 = vrot.lane.b32.xlu0 %v4335_v42, %s3780_s28 }
 0x39a   : > { %1833 = vrot.lane.b32.xlu1 %v4339_v43, %s3780_s28  ;;  %v4345_v44 = vpop.f32.mrb[12].mxu0 }
 0x39b   : > { %v4347_v45 = vpop.f32.mrb[13].mxu0 }
 0x39c   : > { %v4349_v46 = vpop.f32.mrb[14].mxu0 }
 0x39d   : > { %v4351_v47 = vpop.f32.mrb[15].mxu0 }
 0x39e   : > { %v4353_v48 = vpop.f32.mrb[12].mxu1 }
 0x39f   : > { %v1777_v49 = vsub.f32 %v4345_v44, %v4353_v48  ;;  %v4357_v50 = vpop.f32.mrb[13].mxu1 }
 0x3a0   : > { %v1775_v51 = vsub.f32 %v4347_v45, %v4357_v50  ;;  %v4361_v52 = vpop.f32.mrb[14].mxu1 }
 0x3a1   : > { %v1778_v53 = vsub.f32 %v4349_v46, %v4361_v52  ;;  %v4365_v54 = vpop.f32.mrb[15].mxu1  ;;  %v4375_v63 = vmul.f32 %v1777_v49, %v1777_v49 }
 0x3a2   : > { %v4367_v55 = vmul.f32 %v1775_v51, %v1775_v51  ;;  %v1776_v56 = vsub.f32 %v4351_v47, %v4365_v54 }
 0x3a3   : > { %v4379_v1 = vmul.f32 %v1778_v53, %v1778_v53 }
 0x3a4   : > { %v4371_v57 = vmul.f32 %v1776_v56, %v1776_v56  ;;  %1835 = vrot.lane.b32.xlu0 %v4367_v55, %s3780_s28 }
 0x3a6   : > { %1837 = vrot.lane.b32.xlu1 %v4371_v57, %s3780_s28 }
 0x3a8   : > { %1839 = vrot.lane.b32.xlu0 %v4375_v63, %s3780_s28 }
 0x3aa   : > { %1841 = vrot.lane.b32.xlu1 %v4379_v1, %s3780_s28 }
 0x3e6   : > { %v1812_v6 = vpop.permute.xlu0 %1811 }
 0x3e7   : > { %v1859_v15 = vadd.f32 %v1812_v6, %v4247_v5 }
 0x3e8   : > { %v1814_v17 = vpop.permute.xlu1 %1813 }
 0x3e9   : > { %3734 = vrsqrt.f32 %v1859_v15  ;;  %v1860_v21 = vadd.f32 %v1814_v17, %v4251_v7  ;;  %vm1877_vm6 = vcmp.eq.f32.partialorder %v1859_v15, inf  ;;  %v1880_v53 = vand.u32 2147483648, %v1859_v15 }
 0x3ea   : > { %v1816_v23 = vpop.permute.xlu0 %1815  ;;  %vm1879_vm7 = vcmp.eq.f32.partialorder %v1859_v15, 0.0 }
 0x3eb   : > { %3736 = vrsqrt.f32 %v1860_v21  ;;  %v1861_v33 = vadd.f32 %v1816_v23, %v4255_v8  ;;  %vm1884_vm8 = vcmp.eq.f32.partialorder %v1860_v21, inf  ;;  %v1887_v8 = vand.u32 2147483648, %v1860_v21 }
 0x3ec   : > { %v1818_v35 = vpop.permute.xlu1 %1817  ;;  %vm1886_vm9 = vcmp.eq.f32.partialorder %v1860_v21, 0.0 }
 0x3ed   : > { %3738 = vrsqrt.f32 %v1861_v33  ;;  %v1862_v37 = vadd.f32 %v1818_v35, %v4259_v9  ;;  %vm1891_vm10 = vcmp.eq.f32.partialorder %v1861_v33, inf  ;;  %vm1893_vm11 = vcmp.eq.f32.partialorder %v1861_v33, 0.0 }
 0x3ef   : > { %3740 = vrsqrt.f32 %v1862_v37  ;;  %vm1898_vm12 = vcmp.eq.f32.partialorder %v1862_v37, inf  ;;  %vm1900_vm13 = vcmp.eq.f32.partialorder %v1862_v37, 0.0 }
 0x3f3   : > { %v3735_v40 = vpop.eup %3734 }
 0x3f4   : > { %v1876_v49 = vmul.f32 %v3735_v40, %v1859_v15 }
 0x3f5   : > { %v3737_v51 = vpop.eup %3736 }
 0x3f6   : > { %v1820_v56 = vpop.permute.xlu0 %1819  ;;  %v1878_v5 = vsel %vm1877_vm6, %v1859_v15, %v1876_v49  ;;  %v1883_v3 = vmul.f32 %v3737_v51, %v1860_v21  ;;  %v1894_v49 = vand.u32 2147483648, %v1861_v33 }
 0x3f7   : > { %v3739_v6 = vpop.eup %3738  ;;  %v1863_v7 = vadd.f32 %v1820_v56, %v4287_v22  ;;  %v1881_v17 = vsel %vm1879_vm7, %v1880_v53, %v1878_v5  ;;  %v1901_v5 = vand.u32 2147483648, %v1862_v37 }
 0x3f8   : > { %1990 = vperm.xlu0 %3732, %v1881_v17   ;;  %v1822_v23 = vpop.permute.xlu1 %1821  ;;  %v1885_v29 = vsel %vm1884_vm8, %v1860_v21, %v1883_v3  ;;  %v1890_v9 = vmul.f32 %v3739_v6, %v1861_v33 }
 0x3f9   : > { %v3741_v35 = vpop.eup %3740  ;;  %3742 = vrsqrt.f32 %v1863_v7  ;;  %v1864_v40 = vadd.f32 %v1822_v23, %v4291_v25  ;;  %v1888_v24 = vsel %vm1886_vm9, %v1887_v8, %v1885_v29  ;;  %vm1905_vm14 = vcmp.eq.f32.partialorder %v1863_v7, inf }
 0x3fa   : > { %v1824_v15 = vpop.permute.xlu0 %1823  ;;  %1995 = vperm.xlu1 %3733, %v1888_v24   ;;  %v1892_v51 = vsel %vm1891_vm10, %v1861_v33, %v1890_v9  ;;  %v1897_v22 = vmul.f32 %v3741_v35, %v1862_v37  ;;  %v1908_v17 = vand.u32 2147483648, %v1863_v7  ;;  %vm1907_vm15 = vcmp.eq.f32.partialorder %v1863_v7, 0.0 }
 0x3fb   : > { %3744 = vrsqrt.f32 %v1864_v40  ;;  %v1865_v53 = vadd.f32 %v1824_v15, %v4295_v26  ;;  %v1895_v56 = vsel %vm1893_vm11, %v1894_v49, %v1892_v51  ;;  %vm1912_vm0 = vcmp.eq.f32.partialorder %v1864_v40, inf }
 0x3fc   : > { %2000 = vperm.xlu0 %3732, %v1895_v56   ;;  %v1826_v21 = vpop.permute.xlu1 %1825  ;;  %v1899_v3 = vsel %vm1898_vm12, %v1862_v37, %v1897_v22  ;;  %v1915_v37 = vand.u32 2147483648, %v1864_v40  ;;  %vm1914_vm1 = vcmp.eq.f32.partialorder %v1864_v40, 0.0 }
 0x3fd   : > { %3746 = vrsqrt.f32 %v1865_v53  ;;  %v1866_v25 = vadd.f32 %v1826_v21, %v4299_v20  ;;  %v1902_v29 = vsel %vm1900_vm13, %v1901_v5, %v1899_v3  ;;  %vm1919_vm2 = vcmp.eq.f32.partialorder %v1865_v53, inf }
 0x3fe   : > { %2005 = vperm.xlu1 %3733, %v1902_v29   ;;  %v1922_v21 = vand.u32 2147483648, %v1865_v53  ;;  %vm1921_vm3 = vcmp.eq.f32.partialorder %v1865_v53, 0.0 }
 0x3ff   : > { %3748 = vrsqrt.f32 %v1866_v25  ;;  %vm1926_vm4 = vcmp.eq.f32.partialorder %v1866_v25, inf  ;;  %vm1928_vm5 = vcmp.eq.f32.partialorder %v1866_v25, 0.0 }
 0x403   : > { %v3743_v24 = vpop.eup %3742 }
 0x404   : > { %v1904_v6 = vmul.f32 %v3743_v24, %v1863_v7 }
 0x405   : > { %v3745_v33 = vpop.eup %3744 }
 0x406   : > { %v1828_v8 = vpop.permute.xlu0 %1827  ;;  %v1906_v23 = vsel %vm1905_vm14, %v1863_v7, %v1904_v6  ;;  %v1911_v26 = vmul.f32 %v3745_v33, %v1864_v40  ;;  %v1929_v6 = vand.u32 2147483648, %v1866_v25 }
 0x407   : > { %v3747_v9 = vpop.eup %3746  ;;  %v1867_v35 = vadd.f32 %v1828_v8, %v4327_v39  ;;  %v1909_v49 = vsel %vm1907_vm15, %v1908_v17, %v1906_v23 }
 0x408   : > { %2010 = vperm.xlu0 %3732, %v1909_v49   ;;  %v1830_v20 = vpop.permute.xlu1 %1829  ;;  %v1913_v15 = vsel %vm1912_vm0, %v1864_v40, %v1911_v26  ;;  %v1918_v51 = vmul.f32 %v3747_v9, %v1865_v53 }
 0x409   : > { %v3749_v22 = vpop.eup %3748  ;;  %3750 = vrsqrt.f32 %v1867_v35  ;;  %v1868_v56 = vadd.f32 %v1830_v20, %v4331_v41  ;;  %v1916_v5 = vsel %vm1914_vm1, %v1915_v37, %v1913_v15  ;;  %vm1933_vm6 = vcmp.eq.f32.partialorder %v1867_v35, inf }
 0x40a   : > { %v1832_v7 = vpop.permute.xlu0 %1831  ;;  %2015 = vperm.xlu1 %3733, %v1916_v5   ;;  %v1920_v3 = vsel %vm1919_vm2, %v1865_v53, %v1918_v51  ;;  %v1925_v39 = vmul.f32 %v3749_v22, %v1866_v25  ;;  %v1936_v26 = vand.u32 2147483648, %v1867_v35  ;;  %vm1935_vm7 = vcmp.eq.f32.partialorder %v1867_v35, 0.0 }
 0x40b   : > { %3752 = vrsqrt.f32 %v1868_v56  ;;  %v1869_v29 = vadd.f32 %v1832_v7, %v4335_v42  ;;  %v1923_v24 = vsel %vm1921_vm3, %v1922_v21, %v1920_v3  ;;  %vm1940_vm8 = vcmp.eq.f32.partialorder %v1868_v56, inf }
 0x40c   : > { %2020 = vperm.xlu0 %3732, %v1923_v24   ;;  %v1834_v40 = vpop.permute.xlu1 %1833  ;;  %v1927_v33 = vsel %vm1926_vm4, %v1866_v25, %v1925_v39  ;;  %v1943_v25 = vand.u32 2147483648, %v1868_v56  ;;  %vm1942_vm9 = vcmp.eq.f32.partialorder %v1868_v56, 0.0 }
 0x40d   : > { %3754 = vrsqrt.f32 %v1869_v29  ;;  %v1870_v41 = vadd.f32 %v1834_v40, %v4339_v43  ;;  %v1930_v17 = vsel %vm1928_vm5, %v1929_v6, %v1927_v33  ;;  %vm1947_vm10 = vcmp.eq.f32.partialorder %v1869_v29, inf }
 0x40e   : > { %2025 = vperm.xlu1 %3733, %v1930_v17   ;;  %v1950_v3 = vand.u32 2147483648, %v1869_v29  ;;  %vm1949_vm11 = vcmp.eq.f32.partialorder %v1869_v29, 0.0 }
 0x40f   : > { %3756 = vrsqrt.f32 %v1870_v41  ;;  %vm1954_vm12 = vcmp.eq.f32.partialorder %v1870_v41, inf  ;;  %v1957_v40 = vand.u32 2147483648, %v1870_v41  ;;  %vm1956_vm13 = vcmp.eq.f32.partialorder %v1870_v41, 0.0 }
 0x413   : > { %v3751_v8 = vpop.eup %3750 }
 0x414   : > { %v1932_v23 = vmul.f32 %v3751_v8, %v1867_v35 }
 0x415   : > { %v3753_v53 = vpop.eup %3752 }
 0x416   : > { %v1836_v9 = vpop.permute.xlu0 %1835  ;;  %v1934_v49 = vsel %vm1933_vm6, %v1867_v35, %v1932_v23  ;;  %v1939_v42 = vmul.f32 %v3753_v53, %v1868_v56  ;;  %vm2210_vm6 = vcmask 64512  }
 0x417   : > { %v3755_v37 = vpop.eup %3754  ;;  %v1871_v20 = vadd.f32 %v1836_v9, %v4367_v55  ;;  %v1937_v15 = vsel %vm1935_vm7, %v1936_v26, %v1934_v49 }
 0x418   : > { %2030 = vperm.xlu0 %3732, %v1937_v15   ;;  %v1838_v43 = vpop.permute.xlu1 %1837  ;;  %v1941_v51 = vsel %vm1940_vm8, %v1868_v56, %v1939_v42  ;;  %v1946_v22 = vmul.f32 %v3755_v37, %v1869_v29 }
 0x419   : > { %v3757_v5 = vpop.eup %3756  ;;  %3758 = vrsqrt.f32 %v1871_v20  ;;  %v1872_v21 = vadd.f32 %v1838_v43, %v4371_v57  ;;  %v1944_v7 = vsel %vm1942_vm9, %v1943_v25, %v1941_v51  ;;  %vm1961_vm14 = vcmp.eq.f32.partialorder %v1871_v20, inf }
 0x41a   : > { %v1840_v35 = vpop.permute.xlu0 %1839  ;;  %2035 = vperm.xlu1 %3733, %v1944_v7   ;;  %v1948_v39 = vsel %vm1947_vm10, %v1869_v29, %v1946_v22  ;;  %v1953_v55 = vmul.f32 %v3757_v5, %v1870_v41  ;;  %v1964_v53 = vand.u32 2147483648, %v1871_v20  ;;  %vm1963_vm15 = vcmp.eq.f32.partialorder %v1871_v20, 0.0 }
 0x41b   : > { %3760 = vrsqrt.f32 %v1872_v21  ;;  %v1873_v24 = vadd.f32 %v1840_v35, %v4375_v63  ;;  %v1951_v6 = vsel %vm1949_vm11, %v1950_v3, %v1948_v39  ;;  %vm1968_vm0 = vcmp.eq.f32.partialorder %v1872_v21, inf }
 0x41c   : > { %2040 = vperm.xlu0 %3732, %v1951_v6   ;;  %v1842_v56 = vpop.permute.xlu1 %1841  ;;  %v1955_v33 = vsel %vm1954_vm12, %v1870_v41, %v1953_v55  ;;  %v1971_v42 = vand.u32 2147483648, %v1872_v21  ;;  %vm1970_vm1 = vcmp.eq.f32.partialorder %v1872_v21, 0.0 }
 0x41d   : > { %3762 = vrsqrt.f32 %v1873_v24  ;;  %v1874_v57 = vadd.f32 %v1842_v56, %v4379_v1  ;;  %v1958_v17 = vsel %vm1956_vm13, %v1957_v40, %v1955_v33  ;;  %vm1975_vm2 = vcmp.eq.f32.partialorder %v1873_v24, inf }
 0x41e   : > { %2045 = vperm.xlu1 %3733, %v1958_v17   ;;  %v1978_v25 = vand.u32 2147483648, %v1873_v24  ;;  %vm1977_vm3 = vcmp.eq.f32.partialorder %v1873_v24, 0.0 }
 0x41f   : > { %3764 = vrsqrt.f32 %v1874_v57  ;;  %vm1982_vm4 = vcmp.eq.f32.partialorder %v1874_v57, inf  ;;  %vm1984_vm5 = vcmp.eq.f32.partialorder %v1874_v57, 0.0 }
 0x423   : > { %v3759_v8 = vpop.eup %3758 }
 0x424   : > { %v1960_v23 = vmul.f32 %v3759_v8, %v1871_v20 }
 0x425   : > { %v3761_v29 = vpop.eup %3760 }
 0x426   : > { %v1962_v26 = vsel %vm1961_vm14, %v1871_v20, %v1960_v23  ;;  %v1967_v63 = vmul.f32 %v3761_v29, %v1872_v21  ;;  %v1985_v20 = vand.u32 2147483648, %v1874_v57 }
 0x427   : > { %v3763_v9 = vpop.eup %3762  ;;  %v1965_v49 = vsel %vm1963_vm15, %v1964_v53, %v1962_v26 }
 0x428   : > { %2050 = vperm.xlu0 %3732, %v1965_v49   ;;  %v1969_v41 = vsel %vm1968_vm0, %v1872_v21, %v1967_v63  ;;  %v1974_v37 = vmul.f32 %v3763_v9, %v1873_v24  ;;  %v3238_v21 = vld [vmem:[%s4838_s12] ss:$0 sm:$0xff] }
 0x429   : > { %v3765_v1 = vpop.eup %3764  ;;  %v1972_v15 = vsel %vm1970_vm1, %v1971_v42, %v1969_v41 }
 0x42a   : > { %2055 = vperm.xlu1 %3733, %v1972_v15   ;;  %v1976_v43 = vsel %vm1975_vm2, %v1873_v24, %v1974_v37  ;;  %v1981_v51 = vmul.f32 %v3765_v1, %v1874_v57 }
 0x42b   : > { %v1979_v22 = vsel %vm1977_vm3, %v1978_v25, %v1976_v43 }
 0x42c   : > { %2060 = vperm.xlu0 %3732, %v1979_v22   ;;  %v1983_v5 = vsel %vm1982_vm4, %v1874_v57, %v1981_v51 }
 0x42d   : > { %v1986_v7 = vsel %vm1984_vm5, %v1985_v20, %v1983_v5 }
 0x42e   : > { %2065 = vperm.xlu1 %3733, %v1986_v7  }
 0x430   : > { %2145 = vrot.lane.b32.xlu0 %v4237_v0, %s3781_s26  ;;  %v4446_v0 = vld [vmem:[%s4836_s10] ss:$0 sm:$0xff] }
 0x432   : > { %2147 = vrot.lane.b32.xlu1 %v4245_v4, %s3781_s26 }
 0x434   : > { %2149 = vrot.lane.b32.xlu0 %v4233_v62, %s3781_s26  ;;  %v4441_v62 = vld [vmem:[%s4835_s9] ss:$0 sm:$0xff] }
 0x436   : > { %2490 = vrot.lane.b32.xlu1 %v3238_v21, %s3782_s18 }
 0x438   : > { %2151 = vrot.lane.b32.xlu0 %v4241_v2, %s3781_s26 }
 0x43a   : > { %2153 = vrot.lane.b32.xlu1 %v4277_v16, %s3781_s26 }
 0x43c   : > { %2155 = vrot.lane.b32.xlu0 %v4285_v19, %s3781_s26 }
 0x43e   : > { %2157 = vrot.lane.b32.xlu1 %v4273_v14, %s3781_s26 }
 0x440   : > { %2159 = vrot.lane.b32.xlu0 %v4281_v18, %s3781_s26 }
 0x442   : > { %2161 = vrot.lane.b32.xlu1 %v4317_v34, %s3781_s26 }
 0x444   : > { %2163 = vrot.lane.b32.xlu0 %v4325_v38, %s3781_s26 }
 0x446   : > { %2165 = vrot.lane.b32.xlu1 %v4313_v32, %s3781_s26 }
 0x448   : > { %2167 = vrot.lane.b32.xlu0 %v4321_v36, %s3781_s26 }
 0x44a   : > { %2169 = vrot.lane.b32.xlu1 %v4357_v50, %s3781_s26 }
 0x44c   : > { %2171 = vrot.lane.b32.xlu0 %v4365_v54, %s3781_s26 }
 0x44e   : > { %2173 = vrot.lane.b32.xlu1 %v4353_v48, %s3781_s26 }
 0x477   : > { %v1991_v2 = vpop.permute.xlu0 %1990 }
 0x478   : > { %v2074_v4 = vmul.f32 %v4441_v62, %v1991_v2 }
 0x479   : > { %v1996_v14 = vpop.permute.xlu1 %1995 }
 0x47a   : > { %v2097_v16 = vadd.f32 %v4446_v0, %v2074_v4  ;;  %v2075_v18 = vmul.f32 %v4441_v62, %v1996_v14 }
 0x47b   : > { %v2001_v19 = vpop.permute.xlu0 %2000 }
 0x47c   : > { %v2113_v32 = vmax.f32 %v2097_v16, 0.0  ;;  %v2098_v34 = vadd.f32 %v4446_v0, %v2075_v18  ;;  %v2076_v36 = vmul.f32 %v4441_v62, %v2001_v19 }
 0x47d   : > { %v2006_v38 = vpop.permute.xlu1 %2005 }
 0x47e   : > { %v2114_v48 = vmax.f32 %v2098_v34, 0.0  ;;  %v2099_v50 = vadd.f32 %v4446_v0, %v2076_v36  ;;  %v2077_v54 = vmul.f32 %v4441_v62, %v2006_v38  ;;  %3534 = vmatprep.mubr.msk.f32.mxu0 %vm2210_vm6, %v2113_v32 }
 0x480   : > { %v2115_v3 = vmax.f32 %v2099_v50, 0.0  ;;  %v2100_v35 = vadd.f32 %v4446_v0, %v2077_v54  ;;  %3535 = vmatmul.mubr.msk.f32.vlgmr.msra.gmra.mrb[16].mxu0 %vm2210_vm6, %v2114_v48 }
 0x482   : > { %v2116_v39 = vmax.f32 %v2100_v35, 0.0  ;;  %3537 = vmatprep.mubr.msk.f32.mxu0 %vm2210_vm6, %v2115_v3 }
 0x484   : > { %3538 = vmatmul.mubr.msk.f32.gmra.mrb[18].mxu0 %vm2210_vm6, %v2116_v39 }
 0x487   : > { %v2011_v55 = vpop.permute.xlu0 %2010 }
 0x488   : > { %v2078_v24 = vmul.f32 %v4441_v62, %v2011_v55 }
 0x489   : > { %v2016_v6 = vpop.permute.xlu1 %2015 }
 0x48a   : > { %v2101_v40 = vadd.f32 %v4446_v0, %v2078_v24  ;;  %v2079_v56 = vmul.f32 %v4441_v62, %v2016_v6 }
 0x48b   : > { %v2021_v33 = vpop.permute.xlu0 %2020 }
 0x48c   : > { %v2117_v57 = vmax.f32 %v2101_v40, 0.0  ;;  %v2102_v17 = vadd.f32 %v4446_v0, %v2079_v56  ;;  %v2080_v8 = vmul.f32 %v4441_v62, %v2021_v33 }
 0x48d   : > { %v2026_v23 = vpop.permute.xlu1 %2025 }
 0x48e   : > { %v2118_v29 = vmax.f32 %v2102_v17, 0.0  ;;  %v2103_v53 = vadd.f32 %v4446_v0, %v2080_v8  ;;  %v2081_v26 = vmul.f32 %v4441_v62, %v2026_v23  ;;  %3540 = vmatprep.mubr.msk.f32.mxu0 %vm2210_vm6, %v2117_v57 }
 0x490   : > { %v2119_v63 = vmax.f32 %v2103_v53, 0.0  ;;  %v2104_v9 = vadd.f32 %v4446_v0, %v2081_v26  ;;  %3541 = vmatmul.mubr.msk.f32.gmra.mrb[20].mxu0 %vm2210_vm6, %v2118_v29  ;;  %v2525_v26 = vld [vmem:[%s4839_s13] sm:$0xff] }
 0x491   : > { %3558 = vmatprep.subr.mxu1 %v2525_v26 }
 0x492   : > { %v2120_v49 = vmax.f32 %v2104_v9, 0.0  ;;  %3543 = vmatprep.mubr.msk.f32.mxu0 %vm2210_vm6, %v2119_v63  ;;  %3559 = vmatpush3.msra.mxu1 %v2525_v26 }
 0x494   : > { %3544 = vmatmul.mubr.msk.f32.gmra.mrb[22].mxu0 %vm2210_vm6, %v2120_v49 }
 0x497   : > { %v2031_v42 = vpop.permute.xlu0 %2030 }
 0x498   : > { %v2082_v41 = vmul.f32 %v4441_v62, %v2031_v42 }
 0x499   : > { %v2036_v37 = vpop.permute.xlu1 %2035 }
 0x49a   : > { %v2105_v1 = vadd.f32 %v4446_v0, %v2082_v41  ;;  %v2083_v15 = vmul.f32 %v4441_v62, %v2036_v37 }
 0x49b   : > { %v2041_v25 = vpop.permute.xlu0 %2040 }
 0x49c   : > { %v2121_v43 = vmax.f32 %v2105_v1, 0.0  ;;  %v2106_v51 = vadd.f32 %v4446_v0, %v2083_v15  ;;  %v2084_v22 = vmul.f32 %v4441_v62, %v2041_v25 }
 0x49d   : > { %v2046_v20 = vpop.permute.xlu1 %2045 }
 0x49e   : > { %v2122_v5 = vmax.f32 %v2106_v51, 0.0  ;;  %v2107_v7 = vadd.f32 %v4446_v0, %v2084_v22  ;;  %v2085_v21 = vmul.f32 %v4441_v62, %v2046_v20  ;;  %3546 = vmatprep.mubr.msk.f32.mxu0 %vm2210_vm6, %v2121_v43 }
 0x4a0   : > { %v2123_v2 = vmax.f32 %v2107_v7, 0.0  ;;  %v2108_v4 = vadd.f32 %v4446_v0, %v2085_v21  ;;  %3547 = vmatmul.mubr.msk.f32.gmra.mrb[24].mxu0 %vm2210_vm6, %v2122_v5 }
 0x4a2   : > { %v2124_v14 = vmax.f32 %v2108_v4, 0.0  ;;  %3549 = vmatprep.mubr.msk.f32.mxu0 %vm2210_vm6, %v2123_v2 }
 0x4a4   : > { %3550 = vmatmul.mubr.msk.f32.gmra.mrb[26].mxu0 %vm2210_vm6, %v2124_v14 }
 0x4a7   : > { %v2051_v16 = vpop.permute.xlu0 %2050 }
 0x4a8   : > { %v2086_v18 = vmul.f32 %v4441_v62, %v2051_v16 }
 0x4a9   : > { %v2056_v19 = vpop.permute.xlu1 %2055 }
 0x4aa   : > { %v2109_v32 = vadd.f32 %v4446_v0, %v2086_v18  ;;  %v2087_v34 = vmul.f32 %v4441_v62, %v2056_v19 }
 0x4ab   : > { %v2061_v36 = vpop.permute.xlu0 %2060 }
 0x4ac   : > { %v2125_v38 = vmax.f32 %v2109_v32, 0.0  ;;  %v2110_v48 = vadd.f32 %v4446_v0, %v2087_v34  ;;  %v2088_v50 = vmul.f32 %v4441_v62, %v2061_v36 }
 0x4ad   : > { %v2066_v54 = vpop.permute.xlu1 %2065 }
 0x4ae   : > { %v2126_v3 = vmax.f32 %v2110_v48, 0.0  ;;  %v2111_v35 = vadd.f32 %v4446_v0, %v2088_v50  ;;  %v2089_v39 = vmul.f32 %v4441_v62, %v2066_v54  ;;  %3552 = vmatprep.mubr.msk.f32.mxu0 %vm2210_vm6, %v2125_v38 }
 0x4af   : > { %v2146_v37 = vpop.permute.xlu0 %2145 }
 0x4b0   : > { %v2127_v55 = vmax.f32 %v2111_v35, 0.0  ;;  %v2112_v24 = vadd.f32 %v4446_v0, %v2089_v39  ;;  %3553 = vmatmul.mubr.msk.f32.gmra.mrb[28].mxu0 %vm2210_vm6, %v2126_v3  ;;  %v2193_v19 = vadd.f32 %v2146_v37, %v4227_v59 }
 0x4b1   : > { %v2148_v41 = vpop.permute.xlu1 %2147 }
 0x4b2   : > { %v2128_v6 = vmax.f32 %v2112_v24, 0.0  ;;  %3555 = vmatprep.mubr.msk.f32.mxu0 %vm2210_vm6, %v2127_v55  ;;  %v2194_v18 = vadd.f32 %v2148_v41, %v4231_v61 }
 0x4b3   : > { %v2150_v15 = vpop.permute.xlu0 %2149 }
 0x4b4   : > { %3556 = vmatmul.mubr.msk.f32.gmra.mrb[30].mxu0 %vm2210_vm6, %v2128_v6  ;;  %v2195_v50 = vadd.f32 %v4225_v58, %v2150_v15 }
 0x4b5   : > { %v4517_v1 = vpop.permute.xlu1 %2490 }
 0x4b7   : > { %v2152_v43 = vpop.permute.xlu0 %2151 }
 0x4b8   : > { %v2196_v59 = vadd.f32 %v4229_v60, %v2152_v43 }
 0x4b9   : > { %v2154_v25 = vpop.permute.xlu1 %2153 }
 0x4bb   : > { %v2156_v22 = vpop.permute.xlu0 %2155 }
 0x4bd   : > { %v2158_v51 = vpop.permute.xlu1 %2157 }
 0x4bf   : > { %v2160_v5 = vpop.permute.xlu0 %2159 }
 0x4c1   : > { %v2162_v20 = vpop.permute.xlu1 %2161 }
 0x4c2   : > { %v2201_v15 = vadd.f32 %v2162_v20, %v4307_v28 }
 0x4c3   : > { %v2164_v21 = vpop.permute.xlu0 %2163 }
 0x4c5   : > { %v4519_v7 = vpop.permute.xlu1 %2165 }
 0x4c7   : > { %v2168_v4 = vpop.permute.xlu0 %2167 }
 0x4c9   : > { %v4521_v2 = vpop.permute.xlu1 %2169 }
 0x4cb   : > { %v4525_v16 = vpop.permute.xlu0 %2171 }
 0x4cd   : > { %v4523_v14 = vpop.permute.xlu1 %2173 }
 0x553   : > { %v3536_v40 = vpop.f32.mrb[16].mxu0 }
 0x554   : > { %2422 = vrot.lane.b32.xlu1 %v3536_v40, %s3782_s18  ;;  %v2325_v56 = vpop.f32.mrb[17].mxu0 }
 0x555   : > { %2420 = vrot.lane.b32.xlu0 %v2325_v56, %s3782_s18 }
 0x557   : > { %v3539_v33 = vpop.f32.mrb[18].mxu0 }
 0x558   : > { %v2335_v62 = vpop.f32.mrb[19].mxu0 }
 0x559   : > { %2175 = vrot.lane.b32.xlu0 %v4361_v52, %s3781_s26  ;;  %2424 = vrot.lane.b32.xlu1 %v2335_v62, %s3782_s18  ;;  %v2198_v62 = vadd.f32 %v2156_v22, %v4271_v13 }
 0x55d   : > { %2426 = vrot.lane.b32.xlu0 %v3539_v33, %s3782_s18 }
 0x563   : > { %v3542_v0 = vpop.f32.mrb[20].mxu0 }
 0x564   : > { %2430 = vrot.lane.b32.xlu0 %v3542_v0, %s3782_s18  ;;  %v2345_v57 = vpop.f32.mrb[21].mxu0  ;;  %v2197_v0 = vadd.f32 %v2154_v25, %v4267_v11 }
 0x565   : > { %2428 = vrot.lane.b32.xlu1 %v2345_v57, %s3782_s18 }
 0x567   : > { %v3545_v17 = vpop.f32.mrb[22].mxu0 }
 0x568   : > { %2434 = vrot.lane.b32.xlu0 %v3545_v17, %s3782_s18  ;;  %v2355_v8 = vpop.f32.mrb[23].mxu0 }
 0x569   : > { %2432 = vrot.lane.b32.xlu1 %v2355_v8, %s3782_s18 }
 0x573   : > { %v3548_v23 = vpop.f32.mrb[24].mxu0 }
 0x574   : > { %2438 = vrot.lane.b32.xlu0 %v3548_v23, %s3782_s18  ;;  %v2365_v52 = vpop.f32.mrb[25].mxu0  ;;  %v2200_v23 = vadd.f32 %v4269_v12, %v2160_v5  ;;  %v2204_v5 = vadd.f32 %v4309_v30, %v2168_v4 }
 0x575   : > { %2436 = vrot.lane.b32.xlu1 %v2365_v52, %s3782_s18 }
 0x577   : > { %v3551_v29 = vpop.f32.mrb[26].mxu0 }
 0x578   : > { %2442 = vrot.lane.b32.xlu0 %v3551_v29, %s3782_s18  ;;  %v2375_v53 = vpop.f32.mrb[27].mxu0  ;;  %v2199_v29 = vadd.f32 %v4265_v10, %v2158_v51  ;;  %v2202_v10 = vadd.f32 %v2164_v21, %v4311_v31 }
 0x579   : > { %2440 = vrot.lane.b32.xlu1 %v2375_v53, %s3782_s18 }
 0x583   : > { %v3554_v63 = vpop.f32.mrb[28].mxu0 }
 0x584   : > { %2446 = vrot.lane.b32.xlu0 %v3554_v63, %s3782_s18  ;;  %v2385_v9 = vpop.f32.mrb[29].mxu0 }
 0x585   : > { %2444 = vrot.lane.b32.xlu1 %v2385_v9, %s3782_s18 }
 0x587   : > { %v3557_v49 = vpop.f32.mrb[30].mxu0 }
 0x588   : > { %2450 = vrot.lane.b32.xlu0 %v3557_v49, %s3782_s18  ;;  %v2395_v42 = vpop.f32.mrb[31].mxu0 }
 0x589   : > { %2448 = vrot.lane.b32.xlu1 %v2395_v42, %s3782_s18 }
 0x5c6   : > { %v2423_v32 = vpop.permute.xlu1 %2422 }
 0x5c7   : > { %v2469_v34 = vadd.f32 %v2423_v32, %v2194_v18  ;;  %v2421_v36 = vpop.permute.xlu0 %2420 }
 0x5c8   : > { %v2468_v38 = vadd.f32 %v2421_v36, %v2193_v19  ;;  %v2203_v19 = vadd.f32 %v4305_v27, %v4519_v7  ;;  %v2206_v27 = vadd.f32 %v4525_v16, %v4351_v47  ;;  %v2205_v7 = vadd.f32 %v4521_v2, %v4347_v45 }
 0x5c9   : > { %v2494_v48 = vadd.f32 %v4517_v1, %v2469_v34 }
 0x5ca   : > { %v2493_v54 = vadd.f32 %v4517_v1, %v2468_v38 }
 0x5cb   : > { %v2510_v3 = vmax.f32 %v2494_v48, 0.0  ;;  %v4532_v35 = vpop.permute.xlu0 %2175  ;;  %v2425_v39 = vpop.permute.xlu1 %2424 }
 0x5cc   : > { %v2509_v55 = vmax.f32 %v2493_v54, 0.0  ;;  %v2470_v24 = vadd.f32 %v2425_v39, %v2195_v50 }
 0x5cd   : > { %2551 = vrot.lane.b32.xlu0 %v2510_v3, %s3783_s16 }
 0x5ce   : > { %v2495_v61 = vadd.f32 %v4517_v1, %v2470_v24  ;;  %2549 = vrot.lane.b32.xlu1 %v2509_v55, %s3783_s16  ;;  %v2208_v55 = vadd.f32 %v4349_v46, %v4532_v35 }
 0x5cf   : > { %v2427_v6 = vpop.permute.xlu0 %2426 }
 0x5d0   : > { %v2511_v40 = vmax.f32 %v2495_v61, 0.0  ;;  %v2471_v58 = vadd.f32 %v2427_v6, %v2196_v59  ;;  %v2207_v59 = vadd.f32 %v4345_v44, %v4523_v14 }
 0x5d2   : > { %v2496_v56 = vadd.f32 %v4517_v1, %v2471_v58  ;;  %2553 = vrot.lane.b32.xlu1 %v2511_v40, %s3783_s16 }
 0x5d4   : > { %v2512_v33 = vmax.f32 %v2496_v56, 0.0 }
 0x5d6   : > { %v2431_v57 = vpop.permute.xlu0 %2430  ;;  %2555 = vrot.lane.b32.xlu0 %v2512_v33, %s3783_s16 }
 0x5d7   : > { %v2473_v60 = vadd.f32 %v2431_v57, %v2198_v62  ;;  %v2429_v17 = vpop.permute.xlu1 %2428 }
 0x5d8   : > { %v2472_v8 = vadd.f32 %v2429_v17, %v2197_v0 }
 0x5d9   : > { %v2498_v52 = vadd.f32 %v4517_v1, %v2473_v60 }
 0x5da   : > { %v2497_v53 = vadd.f32 %v4517_v1, %v2472_v8  ;;  %v2435_v26 = vpop.permute.xlu0 %2434 }
 0x5db   : > { %v2514_v63 = vmax.f32 %v2498_v52, 0.0  ;;  %v2475_v9 = vadd.f32 %v2435_v26, %v2200_v23  ;;  %v2433_v13 = vpop.permute.xlu1 %2432 }
 0x5dc   : > { %v2513_v49 = vmax.f32 %v2497_v53, 0.0  ;;  %v2474_v11 = vadd.f32 %v2433_v13, %v2199_v29 }
 0x5dd   : > { %v2500_v42 = vadd.f32 %v4517_v1, %v2475_v9  ;;  %2559 = vrot.lane.b32.xlu0 %v2514_v63, %s3783_s16  ;;  %v4847_v9 = vlaneseq }
 0x5de   : > { %v2499_v41 = vadd.f32 %v4517_v1, %v2474_v11  ;;  %2557 = vrot.lane.b32.xlu1 %v2513_v49, %s3783_s16  ;;  %v4600_v11 = vstv %s3256_s20 }
 0x5df   : > { %v2516_v12 = vmax.f32 %v2500_v42, 0.0  ;;  %v1485_v13 = vshrl.u32 %v4847_v9, 7 }
 0x5e0   : > { %v2515_v37 = vmax.f32 %v2499_v41, 0.0 }
 0x5e1   : > { %2563 = vrot.lane.b32.xlu0 %v2516_v12, %s3783_s16  ;;  %v1486_v49 = vadd.s32 8, %v1485_v13  ;;  %v2760_v42 = vadd.s32 %v4600_v11, %v1485_v13 }
 0x5e2   : > { %2561 = vrot.lane.b32.xlu1 %v2515_v37, %s3783_s16  ;;  %v1487_v37 = vadd.s32 16, %v1485_v13 }
 0x5e3   : > { %v2761_v41 = vadd.s32 %v4600_v11, %v1486_v49  ;;  %vm2776_vm7 = vcmp.lt.s32.totalorder %v2760_v42, 448 }
 0x5e5   : > { %vm2777_vm8 = vcmp.lt.s32.totalorder %v2761_v41, 448 }
 0x5e6   : > { %v2439_v25 = vpop.permute.xlu0 %2438  ;;  %vm4604_vm9 = vmpackc.low %vm2777_vm8, %vm2776_vm7 }
 0x5e7   : > { %v2477_v43 = vadd.f32 %v2439_v25, %v2202_v10  ;;  %v2437_v51 = vpop.permute.xlu1 %2436  ;;  %v1488_v10 = vadd.s32 24, %v1485_v13  ;;  %v1493_v25 = vadd.s32 64, %v1485_v13 }
 0x5e8   : > { %v2476_v22 = vadd.f32 %v2437_v51, %v2201_v15  ;;  %v3171_v15 = vld [vmem:[%s517_s24] ss:$0 sm:$0xff] }
 0x5e9   : > { %v2502_v18 = vadd.f32 %v4517_v1, %v2477_v43  ;;  %vm1507_vm10 = vcmp.eq.s32.totalorder %v1487_v37, %v3171_v15  ;;  %vm1508_vm11 = vcmp.eq.s32.totalorder %v1488_v10, %v3171_v15  ;;  %v1494_v43 = vadd.s32 72, %v1485_v13 }
 0x5ea   : > { %v2501_v32 = vadd.f32 %v4517_v1, %v2476_v22  ;;  %v2443_v34 = vpop.permute.xlu0 %2442  ;;  %v2768_v51 = vadd.s32 %v4600_v11, %v1493_v25  ;;  %vm1505_vm1 = vcmp.eq.s32.totalorder %v1485_v13, %v3171_v15  ;;  %vm1506_vm2 = vcmp.eq.s32.totalorder %v1486_v49, %v3171_v15  ;;  %vm4627_vm5 = vmpackc.low %vm1508_vm11, %vm1507_vm10 }
 0x5eb   : > { %v2518_v36 = vmax.f32 %v2502_v18, 0.0  ;;  %v2479_v38 = vadd.f32 %v2443_v34, %v2204_v5  ;;  %v2441_v48 = vpop.permute.xlu1 %2440  ;;  %v2769_v22 = vadd.s32 %v4600_v11, %v1494_v43  ;;  %v4619_v18 = vadd.s32 80, %v1485_v13  ;;  %vm3281_vm7 = vmpackc.low %vm1506_vm2, %vm1505_vm1 }
 0x5ec   : > { %v2517_v31 = vmax.f32 %v2501_v32, 0.0  ;;  %v2478_v21 = vadd.f32 %v2441_v48, %v2203_v19  ;;  %vm2784_vm12 = vcmp.lt.s32.totalorder %v2768_v51, 448  ;;  %v4621_v19 = vadd.s32 88, %v1485_v13  ;;  %v2842_v32 = vld [vmem:[#allocation3 + $0x10] sm:$0xff] }
 0x5ed   : > { %v2504_v28 = vadd.f32 %v4517_v1, %v2479_v38  ;;  %2567 = vrot.lane.b32.xlu0 %v2518_v36, %s3783_s16  ;;  %vm2785_vm13 = vcmp.lt.s32.totalorder %v2769_v22, 448  ;;  %vm1515_vm15 = vcmp.eq.s32.totalorder %v4619_v18, %v3171_v15  ;;  %vm1513_vm3 = vcmp.eq.s32.totalorder %v1493_v25, %v3171_v15 }
 0x5ee   : > { %v2503_v20 = vadd.f32 %v4517_v1, %v2478_v21  ;;  %2565 = vrot.lane.b32.xlu1 %v2517_v31, %s3783_s16  ;;  %vm4615_vm14 = vmpackc.low %vm2785_vm13, %vm2784_vm12  ;;  %vm1516_vm0 = vcmp.eq.s32.totalorder %v4621_v19, %v3171_v15  ;;  %vm1514_vm4 = vcmp.eq.s32.totalorder %v1494_v43, %v3171_v15  ;;  %v1489_v34 = vadd.s32 32, %v1485_v13 }
 0x5ef   : > { %v2520_v30 = vmax.f32 %v2504_v28, 0.0  ;;  %v1490_v36 = vadd.s32 40, %v1485_v13  ;;  %v1491_v38 = vadd.s32 48, %v1485_v13  ;;  %v1492_v48 = vadd.s32 56, %v1485_v13  ;;  %vm3289_vm8 = vmpackc.low %vm1514_vm4, %vm1513_vm3 }
 0x5f0   : > { %v2519_v4 = vmax.f32 %v2503_v20, 0.0  ;;  %v4631_v31 = vadd.s32 96, %v1485_v13  ;;  %v4633_v21 = vadd.s32 104, %v1485_v13  ;;  %v4854_v28 = vmov 1.0|1.0   ;;  %vm4641_vm10 = vmpackc.low %vm1516_vm0, %vm1515_vm15  ;;  %v2848_v20 = vld [vmem:[#allocation3 + $0x40] sm:$0xff] }
 0x5f1   : > { %2571 = vrot.lane.b32.xlu0 %v2520_v30, %s3783_s16  ;;  %3600 = vmatprep.mubr.msk.bf16.mxu0 %vm3281_vm7, %v4854_v28  ;;  %vm1509_vm11 = vcmp.eq.s32.totalorder %v1489_v34, %v3171_v15  ;;  %vm1510_vm12 = vcmp.eq.s32.totalorder %v1490_v36, %v3171_v15  ;;  %vm1511_vm3 = vcmp.eq.s32.totalorder %v1491_v38, %v3171_v15  ;;  %v2843_v30 = vld [vmem:[#allocation3 + $0x18] sm:$0xff] }
 0x5f2   : > { %2569 = vrot.lane.b32.xlu1 %v2519_v4, %s3783_s16  ;;  %vm4645_vm13 = vmpackc.low %vm1510_vm12, %vm1509_vm11  ;;  %vm1517_vm1 = vcmp.eq.s32.totalorder %v4631_v31, %v3171_v15  ;;  %vm1518_vm2 = vcmp.eq.s32.totalorder %v4633_v21, %v3171_v15  ;;  %vm1512_vm4 = vcmp.eq.s32.totalorder %v1492_v48, %v3171_v15 }
 0x5f3   : > { %vm4651_vm7 = vmpackc.low %vm1518_vm2, %vm1517_vm1 }
 0x5f4   : > { %vm4655_vm15 = vmpackc.low %vm1512_vm4, %vm1511_vm3 }
 0x5f6   : > { %v2447_v50 = vpop.permute.xlu0 %2446 }
 0x5f7   : > { %v2481_v54 = vadd.f32 %v2447_v50, %v2206_v27  ;;  %v2445_v3 = vpop.permute.xlu1 %2444  ;;  %v4661_v50 = vadd.s32 120, %v1485_v13 }
 0x5f8   : > { %v2480_v39 = vadd.f32 %v2445_v3, %v2205_v7  ;;  %v4659_v7 = vadd.s32 112, %v1485_v13  ;;  %v4672_v3 = vld [vmem:[%s4840_s14] ss:$0 sm:$0xff] }
 0x5f9   : > { %v2506_v24 = vadd.f32 %v4517_v1, %v2481_v54  ;;  %v2775_v51 = vadd.s32 %v4600_v11, %v4661_v50 }
 0x5fa   : > { %v2505_v61 = vadd.f32 %v4517_v1, %v2480_v39  ;;  %v2451_v6 = vpop.permute.xlu0 %2450  ;;  %vm1519_vm0 = vcmp.eq.s32.totalorder %v4659_v7, %v3171_v15  ;;  %v2774_v43 = vadd.s32 %v4600_v11, %v4659_v7 }
 0x5fb   : > { %v2522_v40 = vmax.f32 %v2506_v24, 0.0  ;;  %v2483_v47 = vadd.f32 %v2451_v6, %v2208_v55  ;;  %v2449_v16 = vpop.permute.xlu1 %2448  ;;  %v2763_v6 = vadd.s32 %v4600_v11, %v1488_v10  ;;  %v2772_v10 = vadd.s32 %v4600_v11, %v4631_v31  ;;  %v2850_v31 = vld [vmem:[#allocation3 + $0x50] sm:$0xff] }
 0x5fc   : > { %v2521_v58 = vmax.f32 %v2505_v61, 0.0  ;;  %v2482_v45 = vadd.f32 %v2449_v16, %v2207_v59  ;;  %v2762_v61 = vadd.s32 %v4600_v11, %v1487_v37 }
 0x5fd   : > { %v2508_v2 = vadd.f32 %v4517_v1, %v2483_v47  ;;  %2575 = vrot.lane.b32.xlu0 %v2522_v40, %s3783_s16  ;;  %vm2779_vm1 = vcmp.lt.s32.totalorder %v2763_v6, 448 }
 0x5fe   : > { %v2507_v56 = vadd.f32 %v4517_v1, %v2482_v45  ;;  %2573 = vrot.lane.b32.xlu1 %v2521_v58, %s3783_s16  ;;  %vm2778_vm12 = vcmp.lt.s32.totalorder %v2762_v61, 448  ;;  %v2849_v61 = vld [vmem:[#allocation3 + $0x48] sm:$0xff] }
 0x5ff   : > { %v2524_v46 = vmax.f32 %v2508_v2, 0.0  ;;  %vm3260_vm2 = vmpackc.low %vm2779_vm1, %vm2778_vm12 }
 0x600   : > { %v2523_v35 = vmax.f32 %v2507_v56, 0.0  ;;  %v2764_v56 = vadd.s32 %v4600_v11, %v1489_v34 }
 0x601   : > { %2579 = vrot.lane.b32.xlu0 %v2524_v46, %s3783_s16  ;;  %v2765_v46 = vadd.s32 %v4600_v11, %v1490_v36 }
 0x602   : > { %2577 = vrot.lane.b32.xlu1 %v2523_v35, %s3783_s16  ;;  %vm2780_vm3 = vcmp.lt.s32.totalorder %v2764_v56, 448  ;;  %v2846_v56 = vld [vmem:[#allocation3 + $0x30] sm:$0xff] }
 0x63f   : > { %v2552_v14 = vpop.permute.xlu0 %2551 }
 0x640   : > { %v2550_v44 = vpop.permute.xlu1 %2549 }
 0x641   : > { %3560 = vmatprep.mubr.msk.f32.mxu1 %vm2210_vm6, %v2550_v44  ;;  %v2766_v44 = vadd.s32 %v4600_v11, %v1491_v38 }
 0x642   : > { %3561 = vmatmul.mubr.msk.f32.vlgmr.msra.gmra.mrb[16].mxu1 %vm2210_vm6, %v2552_v14  ;;  %v2767_v14 = vadd.s32 %v4600_v11, %v1492_v48 }
 0x644   : > { %v2554_v33 = vpop.permute.xlu1 %2553 }
 0x645   : > { %3563 = vmatprep.mubr.msk.f32.mxu1 %vm2210_vm6, %v2554_v33 }
 0x648   : > { %v2556_v62 = vpop.permute.xlu0 %2555 }
 0x649   : > { %3564 = vmatmul.mubr.msk.f32.gmra.mrb[18].mxu1 %vm2210_vm6, %v2556_v62 }
 0x64f   : > { %v2560_v1 = vpop.permute.xlu0 %2559 }
 0x650   : > { %v2558_v0 = vpop.permute.xlu1 %2557 }
 0x651   : > { %3566 = vmatprep.mubr.msk.f32.mxu1 %vm2210_vm6, %v2558_v0 }
 0x652   : > { %3567 = vmatmul.mubr.msk.f32.gmra.mrb[20].mxu1 %vm2210_vm6, %v2560_v1 }
 0x653   : > { %v2564_v60 = vpop.permute.xlu0 %2563 }
 0x654   : > { %v2562_v57 = vpop.permute.xlu1 %2561 }
 0x655   : > { %3569 = vmatprep.mubr.msk.f32.mxu1 %vm2210_vm6, %v2562_v57 }
 0x656   : > { %3570 = vmatmul.mubr.msk.f32.gmra.mrb[22].mxu1 %vm2210_vm6, %v2564_v60 }
 0x65f   : > { %v2568_v17 = vpop.permute.xlu0 %2567 }
 0x660   : > { %v2566_v8 = vpop.permute.xlu1 %2565 }
 0x661   : > { %3572 = vmatprep.mubr.msk.f32.mxu1 %vm2210_vm6, %v2566_v8 }
 0x662   : > { %3573 = vmatmul.mubr.msk.f32.gmra.mrb[24].mxu1 %vm2210_vm6, %v2568_v17 }
 0x663   : > { %v2572_v52 = vpop.permute.xlu0 %2571 }
 0x664   : > { %v2570_v23 = vpop.permute.xlu1 %2569 }
 0x665   : > { %3575 = vmatprep.mubr.msk.f32.mxu1 %vm2210_vm6, %v2570_v23 }
 0x666   : > { %3576 = vmatmul.mubr.msk.f32.gmra.mrb[26].mxu1 %vm2210_vm6, %v2572_v52 }
 0x66f   : > { %v2576_v29 = vpop.permute.xlu0 %2575 }
 0x670   : > { %v2574_v53 = vpop.permute.xlu1 %2573 }
 0x671   : > { %3578 = vmatprep.mubr.msk.f32.mxu1 %vm2210_vm6, %v2574_v53  ;;  %v2771_v53 = vadd.s32 %v4600_v11, %v4621_v19 }
 0x672   : > { %3579 = vmatmul.mubr.msk.f32.gmra.mrb[28].mxu1 %vm2210_vm6, %v2576_v29  ;;  %v2770_v29 = vadd.s32 %v4600_v11, %v4619_v18 }
 0x673   : > { %v2580_v63 = vpop.permute.xlu0 %2579 }
 0x674   : > { %v2578_v26 = vpop.permute.xlu1 %2577  ;;  %vm2786_vm1 = vcmp.lt.s32.totalorder %v2770_v29, 448 }
 0x675   : > { %3581 = vmatprep.mubr.msk.f32.mxu1 %vm2210_vm6, %v2578_v26 }
 0x676   : > { %3582 = vmatmul.mubr.msk.f32.gmra.mrb[30].mxu1 %vm2210_vm6, %v2580_v63 }
 0x677   : > { %3608 = vmatprep.mubr.msk.bf16.mxu1 %vm3289_vm8, %v4854_v28  ;;  %vm1520_vm8 = vcmp.eq.s32.totalorder %v4661_v50, %v3171_v15  ;;  %v2773_v15 = vadd.s32 %v4600_v11, %v4633_v21  ;;  %v2840_v21 = vld [vmem:[#allocation3] sm:$0xff] }
 0x678   : > { %vm4665_vm11 = vmpackc.low %vm1520_vm8, %vm1519_vm0  ;;  %vm2782_vm0 = vcmp.lt.s32.totalorder %v2766_v44, 448  ;;  %vm2783_vm8 = vcmp.lt.s32.totalorder %v2767_v14, 448  ;;  %v2852_v44 = vld [vmem:[#allocation3 + $0x60] sm:$0xff] }
 0x679   : > { %vm3266_vm12 = vmpackc.low %vm2783_vm8, %vm2782_vm0  ;;  %vm2790_vm0 = vcmp.lt.s32.totalorder %v2774_v43, 448  ;;  %vm2791_vm8 = vcmp.lt.s32.totalorder %v2775_v51, 448 }
 0x715   : > { %v3562_v39 = vpop.f32.mrb[16].mxu1 }
 0x716   : > { %v2685_v55 = vadd.f32 %v3562_v39, %v4672_v3  ;;  %v2679_v24 = vpop.f32.mrb[17].mxu1 }
 0x717   : > { %v2680_v59 = vadd.f32 %v4672_v3, %v2679_v24 }
 0x719   : > { %v3258_v40 = vpack.c.bf16 %v2685_v55, %v2680_v59  ;;  %v2841_v59 = vld [vmem:[#allocation3 + $0x8] sm:$0xff] }
 0x71b   : > { %3584 = vmatprep.subr.msk.bf16.mxu0 %vm4604_vm9, %v3258_v40  ;;  %3616 = vmatprep.subr.msk.bf16.mxu1 %vm4604_vm9, %v3258_v40 }
 0x71c   : > { %v3565_v47 = vpop.f32.mrb[18].mxu1  ;;  %3585 = vmatpush3.bf16.msk.msra.mxu0 %vm4604_vm9, %v3258_v40  ;;  %3624 = vmatpush3.bf16.msk.msra.mxu1 %vm4604_vm9, %v3258_v40  ;;  %vm2781_vm9 = vcmp.lt.s32.totalorder %v2765_v46, 448  ;;  %v2854_v46 = vld [vmem:[#allocation3 + $0x70] sm:$0xff] }
 0x71d   : > { %v2695_v16 = vadd.f32 %v3565_v47, %v4672_v3  ;;  %v2689_v58 = vpop.f32.mrb[19].mxu1  ;;  %vm3263_vm4 = vmpackc.low %vm2781_vm9, %vm2780_vm3  ;;  %vm2788_vm9 = vcmp.lt.s32.totalorder %v2772_v10, 448 }
 0x71e   : > { %v2690_v45 = vadd.f32 %v4672_v3, %v2689_v58 }
 0x720   : > { %v3261_v2 = vpack.c.bf16 %v2695_v16, %v2690_v45 }
 0x722   : > { %3586 = vmatprep.subr.msk.bf16.mxu0 %vm3260_vm2, %v3261_v2  ;;  %3617 = vmatprep.subr.msk.bf16.mxu1 %vm3260_vm2, %v3261_v2 }
 0x723   : > { %3587 = vmatpush3.bf16.msk.msra.mxu0 %vm3260_vm2, %v3261_v2  ;;  %3625 = vmatpush3.bf16.msk.msra.mxu1 %vm3260_vm2, %v3261_v2  ;;  %vm2787_vm2 = vcmp.lt.s32.totalorder %v2771_v53, 448 }
 0x724   : > { %vm3272_vm3 = vmpackc.low %vm2787_vm2, %vm2786_vm1 }
 0x725   : > { %v3568_v35 = vpop.f32.mrb[20].mxu1 }
 0x726   : > { %v2705_v33 = vadd.f32 %v3568_v35, %v4672_v3  ;;  %v2699_v62 = vpop.f32.mrb[21].mxu1  ;;  %v2844_v35 = vld [vmem:[#allocation3 + $0x20] sm:$0xff] }
 0x727   : > { %v2700_v1 = vadd.f32 %v4672_v3, %v2699_v62  ;;  %v2847_v62 = vld [vmem:[#allocation3 + $0x38] sm:$0xff] }
 0x729   : > { %v3264_v0 = vpack.c.bf16 %v2705_v33, %v2700_v1  ;;  %v3571_v57 = vpop.f32.mrb[22].mxu1  ;;  %v2855_v1 = vld [vmem:[#allocation3 + $0x78] sm:$0xff] }
 0x72a   : > { %v2715_v60 = vadd.f32 %v3571_v57, %v4672_v3  ;;  %v2709_v17 = vpop.f32.mrb[23].mxu1 }
 0x72b   : > { %v2710_v8 = vadd.f32 %v4672_v3, %v2709_v17  ;;  %3588 = vmatprep.subr.msk.bf16.mxu0 %vm3263_vm4, %v3264_v0  ;;  %3618 = vmatprep.subr.msk.bf16.mxu1 %vm3263_vm4, %v3264_v0 }
 0x72c   : > { %3589 = vmatpush3.bf16.msk.msra.mxu0 %vm3263_vm4, %v3264_v0  ;;  %3626 = vmatpush3.bf16.msk.msra.mxu1 %vm3263_vm4, %v3264_v0  ;;  %vm2789_vm4 = vcmp.lt.s32.totalorder %v2773_v15, 448 }
 0x72d   : > { %v3267_v23 = vpack.c.bf16 %v2715_v60, %v2710_v8  ;;  %v2845_v8 = vld [vmem:[#allocation3 + $0x28] sm:$0xff] }
 0x72f   : > { %3590 = vmatprep.subr.msk.bf16.mxu0 %vm3266_vm12, %v3267_v23  ;;  %3619 = vmatprep.subr.msk.bf16.mxu1 %vm3266_vm12, %v3267_v23 }
 0x730   : > { %3591 = vmatpush3.bf16.msk.msra.mxu0 %vm3266_vm12, %v3267_v23  ;;  %3627 = vmatpush3.bf16.msk.msra.mxu1 %vm3266_vm12, %v3267_v23  ;;  %vm3278_vm12 = vmpackc.low %vm2791_vm8, %vm2790_vm0  ;;  %v2853_v23 = vld [vmem:[#allocation3 + $0x68] sm:$0xff] }
 0x735   : > { %v3574_v52 = vpop.f32.mrb[24].mxu1 }
 0x736   : > { %v2725_v26 = vadd.f32 %v3574_v52, %v4672_v3  ;;  %v2719_v63 = vpop.f32.mrb[25].mxu1 }
 0x737   : > { %v2720_v9 = vadd.f32 %v4672_v3, %v2719_v63 }
 0x739   : > { %v3270_v13 = vpack.c.bf16 %v2725_v26, %v2720_v9  ;;  %v3577_v49 = vpop.f32.mrb[26].mxu1 }
 0x73a   : > { %v2735_v42 = vadd.f32 %v3577_v49, %v4672_v3  ;;  %v2729_v41 = vpop.f32.mrb[27].mxu1 }
 0x73b   : > { %v2730_v12 = vadd.f32 %v4672_v3, %v2729_v41  ;;  %3592 = vmatprep.subr.msk.bf16.mxu0 %vm4615_vm14, %v3270_v13  ;;  %3620 = vmatprep.subr.msk.bf16.mxu1 %vm4615_vm14, %v3270_v13 }
 0x73c   : > { %3593 = vmatpush3.bf16.msk.msra.mxu0 %vm4615_vm14, %v3270_v13  ;;  %3628 = vmatpush3.bf16.msk.msra.mxu1 %vm4615_vm14, %v3270_v13  ;;  %vm3275_vm14 = vmpackc.low %vm2789_vm4, %vm2788_vm9 }
 0x73d   : > { %v3273_v37 = vpack.c.bf16 %v2735_v42, %v2730_v12 }
 0x73f   : > { %3594 = vmatprep.subr.msk.bf16.mxu0 %vm3272_vm3, %v3273_v37  ;;  %3621 = vmatprep.subr.msk.bf16.mxu1 %vm3272_vm3, %v3273_v37 }
 0x740   : > { %3595 = vmatpush3.bf16.msk.msra.mxu0 %vm3272_vm3, %v3273_v37  ;;  %3629 = vmatpush3.bf16.msk.msra.mxu1 %vm3272_vm3, %v3273_v37 }
 0x745   : > { %v3580_v25 = vpop.f32.mrb[28].mxu1 }
 0x746   : > { %v2745_v22 = vadd.f32 %v3580_v25, %v4672_v3  ;;  %v2739_v5 = vpop.f32.mrb[29].mxu1 }
 0x747   : > { %v2740_v18 = vadd.f32 %v4672_v3, %v2739_v5 }
 0x749   : > { %v3276_v19 = vpack.c.bf16 %v2745_v22, %v2740_v18  ;;  %v3583_v34 = vpop.f32.mrb[30].mxu1 }
 0x74a   : > { %v2755_v36 = vadd.f32 %v3583_v34, %v4672_v3  ;;  %v2749_v38 = vpop.f32.mrb[31].mxu1 }
 0x74b   : > { %v2750_v48 = vadd.f32 %v4672_v3, %v2749_v38  ;;  %3596 = vmatprep.subr.msk.bf16.mxu0 %vm3275_vm14, %v3276_v19  ;;  %3622 = vmatprep.subr.msk.bf16.mxu1 %vm3275_vm14, %v3276_v19  ;;  %v2851_v3 = vld [vmem:[#allocation3 + $0x58] sm:$0xff] }
 0x74c   : > { %3597 = vmatpush3.bf16.msk.msra.mxu0 %vm3275_vm14, %v3276_v19  ;;  %3630 = vmatpush3.bf16.msk.msra.mxu1 %vm3275_vm14, %v3276_v19 }
 0x74d   : > { %v3279_v11 = vpack.c.bf16 %v2755_v36, %v2750_v48 }
 0x74f   : > { %3598 = vmatprep.subr.msk.bf16.mxu0 %vm3278_vm12, %v3279_v11  ;;  %3623 = vmatprep.subr.msk.bf16.mxu1 %vm3278_vm12, %v3279_v11 }
 0x750   : > { %3599 = vmatpush3.bf16.msk.msra.mxu0 %vm3278_vm12, %v3279_v11  ;;  %3631 = vmatpush3.bf16.msk.msra.mxu1 %vm3278_vm12, %v3279_v11 }
 0x753   : > { %3601 = vmatmul.mubr.msk.bf16.vlgmr.msra.gmra.mrb[32].mxu0 %vm4627_vm5, %v4854_v28  ;;  %3609 = vmatmul.mubr.msk.bf16.vlgmr.msra.gmra.mrb[32].mxu1 %vm4641_vm10, %v4854_v28 }
 0x754   : > { %3604 = vmatprep.mubr.msk.bf16.mxu0 %vm4645_vm13, %v4854_v28  ;;  %3612 = vmatprep.mubr.msk.bf16.mxu1 %vm4651_vm7, %v4854_v28 }
 0x75b   : > { %3605 = vmatmul.mubr.msk.bf16.gmra.mrb[36].mxu0 %vm4655_vm15, %v4854_v28  ;;  %3613 = vmatmul.mubr.msk.bf16.gmra.mrb[36].mxu1 %vm4665_vm11, %v4854_v28 }
 0x826   : > { %v3602_v7 = vpop.f32.mrb[32].mxu0  ;;  %v3610_v50 = vpop.f32.mrb[32].mxu1 }
 0x827   : > { %v2963_v39 = vadd.f32 %v3602_v7, %v2842_v32  ;;  %v2971_v55 = vadd.f32 %v3610_v50, %v2850_v31  ;;  %v2898_v4 = vpop.f32.mrb[33].mxu0  ;;  %v2930_v24 = vpop.f32.mrb[33].mxu1 }
 0x828   : > { %v2961_v27 = vadd.f32 %v2898_v4, %v2840_v21  ;;  %v2969_v6 = vadd.f32 %v2930_v24, %v2848_v20  ;;  %v3603_v40 = vpop.f32.mrb[34].mxu0  ;;  %v3611_v47 = vpop.f32.mrb[34].mxu1 }
 0x829   : > { %2979 = vst.msk [vmem:[#allocation3 + $0x10] sm:$0xff] %vm2210_vm6, %v2963_v39  ;;  %2987 = vst.msk [vmem:[#allocation3 + $0x50] sm:$0xff] %vm2210_vm6, %v2971_v55  ;;  %v2964_v28 = vadd.f32 %v3603_v40, %v2843_v30  ;;  %v2972_v54 = vadd.f32 %v3611_v47, %v2851_v3  ;;  %v2901_v16 = vpop.f32.mrb[35].mxu0  ;;  %v2933_v58 = vpop.f32.mrb[35].mxu1 }
 0x82a   : > { %2977 = vst.msk [vmem:[#allocation3] sm:$0xff] %vm2210_vm6, %v2961_v27  ;;  %2985 = vst.msk [vmem:[#allocation3 + $0x40] sm:$0xff] %vm2210_vm6, %v2969_v6  ;;  %v2962_v45 = vadd.f32 %v2901_v16, %v2841_v59  ;;  %v2970_v2 = vadd.f32 %v2933_v58, %v2849_v61 }
 0x82b   : > { %2980 = vst.msk [vmem:[#allocation3 + $0x18] sm:$0xff] %vm2210_vm6, %v2964_v28  ;;  %2988 = vst.msk [vmem:[#allocation3 + $0x58] sm:$0xff] %vm2210_vm6, %v2972_v54 }
 0x82c   : > { %2978 = vst.msk [vmem:[#allocation3 + $0x8] sm:$0xff] %vm2210_vm6, %v2962_v45  ;;  %2986 = vst.msk [vmem:[#allocation3 + $0x48] sm:$0xff] %vm2210_vm6, %v2970_v2 }
 0x82e   : > { %v3606_v14 = vpop.f32.mrb[36].mxu0  ;;  %v3614_v33 = vpop.f32.mrb[36].mxu1  ;;  %2996 = sbr.rel (%p3297_p6) target bundleno = 2112 (0x840), region = 88 }
 0x82f   : > { %v2967_v0 = vadd.f32 %v3606_v14, %v2846_v56  ;;  %v2975_v57 = vadd.f32 %v3614_v33, %v2854_v46  ;;  %v2914_v60 = vpop.f32.mrb[37].mxu0  ;;  %v2946_v17 = vpop.f32.mrb[37].mxu1 }
 0x830   : > { %v2965_v52 = vadd.f32 %v2914_v60, %v2844_v35  ;;  %v2973_v29 = vadd.f32 %v2946_v17, %v2852_v44  ;;  %v3607_v53 = vpop.f32.mrb[38].mxu0  ;;  %v3615_v26 = vpop.f32.mrb[38].mxu1  ;;  %v2999_v10 = vld [vmem:[#allocation3 + $0x10] sm:$0xff] (!%p3297_p6) }
 0x831   : > { %2983 = vst.msk [vmem:[#allocation3 + $0x30] sm:$0xff] %vm2210_vm6, %v2967_v0  ;;  %2991 = vst.msk [vmem:[#allocation3 + $0x70] sm:$0xff] %vm2210_vm6, %v2975_v57  ;;  %v2968_v63 = vadd.f32 %v3607_v53, %v2847_v62  ;;  %v2976_v9 = vadd.f32 %v3615_v26, %v2855_v1  ;;  %v2917_v13 = vpop.f32.mrb[39].mxu0  ;;  %v2949_v49 = vpop.f32.mrb[39].mxu1  ;;  %v2997_v12 = vld [vmem:[#allocation3] sm:$0xff] (!%p3297_p6)  ;;  %v3015_v43 = vmax.f32 (!%p3297_p6), %v2999_v10, 0.0 }
 0x832   : > { %2981 = vst.msk [vmem:[#allocation3 + $0x20] sm:$0xff] %vm2210_vm6, %v2965_v52  ;;  %2989 = vst.msk [vmem:[#allocation3 + $0x60] sm:$0xff] %vm2210_vm6, %v2973_v29  ;;  %v2966_v42 = vadd.f32 %v2917_v13, %v2845_v8  ;;  %v2974_v41 = vadd.f32 %v2949_v49, %v2853_v23  ;;  %v3013_v15 = vmax.f32 (!%p3297_p6), %v2997_v12, 0.0  ;;  %v3000_v51 = vld [vmem:[#allocation3 + $0x18] sm:$0xff] (!%p3297_p6)  ;;  %v3005_v48 = vld [vmem:[#allocation3 + $0x40] sm:$0xff] (!%p3297_p6) }
 0x833   : > { %2984 = vst.msk [vmem:[#allocation3 + $0x38] sm:$0xff] %vm2210_vm6, %v2968_v63  ;;  %2992 = vst.msk [vmem:[#allocation3 + $0x78] sm:$0xff] %vm2210_vm6, %v2976_v9  ;;  %v2998_v37 = vld [vmem:[#allocation3 + $0x8] sm:$0xff] (!%p3297_p6)  ;;  %v3016_v18 = vmax.f32 (!%p3297_p6), %v3000_v51, 0.0  ;;  %v3021_v31 = vmax.f32 (!%p3297_p6), %v3005_v48, 0.0  ;;  %v3007_v20 = vld [vmem:[#allocation3 + $0x50] sm:$0xff] (!%p3297_p6) }
 0x834   : > { %2982 = vst.msk [vmem:[#allocation3 + $0x28] sm:$0xff] %vm2210_vm6, %v2966_v42  ;;  %2990 = vst.msk [vmem:[#allocation3 + $0x68] sm:$0xff] %vm2210_vm6, %v2974_v41  ;;  %v3014_v25 = vmax.f32 (!%p3297_p6), %v2998_v37, 0.0  ;;  %v3006_v21 = vld [vmem:[#allocation3 + $0x48] sm:$0xff] (!%p3297_p6)  ;;  %v3008_v7 = vld [vmem:[#allocation3 + $0x58] sm:$0xff] (!%p3297_p6)  ;;  %v3023_v30 = vmax.f32 (!%p3297_p6), %v3007_v20, 0.0 }
 0x835   : > { %3029 = vst.msk [vmem:[%s4841_s15] sm:$0xff] %vm2210_vm6, %v3013_v15  ;;  %3031 = vst.msk [vmem:[%s4841_s15 + $0x10] sm:$0xff] %vm2210_vm6, %v3015_v43  ;;  %v3022_v50 = vmax.f32 %v3006_v21, 0.0  ;;  %v3024_v3 = vmax.f32 %v3008_v7, 0.0 }
 0x836   : > { %3030 = vst.msk [vmem:[%s4841_s15 + $0x8] sm:$0xff] %vm2210_vm6, %v3014_v25  ;;  %3032 = vst.msk [vmem:[%s4841_s15 + $0x18] sm:$0xff] %vm2210_vm6, %v3016_v18 }
 0x837   : > { %3037 = vst.msk [vmem:[%s4841_s15 + $0x40] sm:$0xff] %vm2210_vm6, %v3021_v31  ;;  %3038 = vst.msk [vmem:[%s4841_s15 + $0x48] sm:$0xff] %vm2210_vm6, %v3022_v50 }
 0x838   : > { %v3003_v36 = vld [vmem:[#allocation3 + $0x30] sm:$0xff]  ;;  %3039 = vst.msk [vmem:[%s4841_s15 + $0x50] sm:$0xff] %vm2210_vm6, %v3023_v30  ;;  %3040 = vst.msk [vmem:[%s4841_s15 + $0x58] sm:$0xff] %vm2210_vm6, %v3024_v3 }
 0x839   : > { %v3001_v22 = vld [vmem:[#allocation3 + $0x20] sm:$0xff]  ;;  %v3019_v11 = vmax.f32 %v3003_v36, 0.0  ;;  %v3011_v4 = vld [vmem:[#allocation3 + $0x70] sm:$0xff] }
 0x83a   : > { %v3017_v19 = vmax.f32 %v3001_v22, 0.0  ;;  %v3004_v38 = vld [vmem:[#allocation3 + $0x38] sm:$0xff]  ;;  %v3009_v39 = vld [vmem:[#allocation3 + $0x60] sm:$0xff]  ;;  %v3027_v61 = vmax.f32 %v3011_v4, 0.0 }
 0x83b   : > { %v3002_v5 = vld [vmem:[#allocation3 + $0x28] sm:$0xff]  ;;  %v3020_v32 = vmax.f32 %v3004_v38, 0.0  ;;  %3035 = vst.msk [vmem:[%s4841_s15 + $0x30] sm:$0xff] %vm2210_vm6, %v3019_v11  ;;  %v3025_v24 = vmax.f32 %v3009_v39, 0.0  ;;  %v3012_v27 = vld [vmem:[#allocation3 + $0x78] sm:$0xff] }
 0x83c   : > { %v3018_v34 = vmax.f32 %v3002_v5, 0.0  ;;  %3033 = vst.msk [vmem:[%s4841_s15 + $0x20] sm:$0xff] %vm2210_vm6, %v3017_v19  ;;  %v3010_v55 = vld [vmem:[#allocation3 + $0x68] sm:$0xff]  ;;  %v3028_v6 = vmax.f32 %v3012_v27, 0.0  ;;  %3043 = vst.msk [vmem:[%s4841_s15 + $0x70] sm:$0xff] %vm2210_vm6, %v3027_v61 }
 0x83d   : > { %3036 = vst.msk [vmem:[%s4841_s15 + $0x38] sm:$0xff] %vm2210_vm6, %v3020_v32  ;;  %v3026_v59 = vmax.f32 %v3010_v55, 0.0  ;;  %3041 = vst.msk [vmem:[%s4841_s15 + $0x60] sm:$0xff] %vm2210_vm6, %v3025_v24 }
 0x83e   : > { %3034 = vst.msk [vmem:[%s4841_s15 + $0x28] sm:$0xff] %vm2210_vm6, %v3018_v34  ;;  %3044 = vst.msk [vmem:[%s4841_s15 + $0x78] sm:$0xff] %vm2210_vm6, %v3028_v6 }
 0x83f   : > { %3042 = vst.msk [vmem:[%s4841_s15 + $0x68] sm:$0xff] %vm2210_vm6, %v3026_v59 }
 0x840 PF: > { %s4865_s19 = sld [smem:[#allocation4_spill]] }
 0x846   : > { %s25_s18 = sadd.s32 1, %s4865_s19  }
 0x847   : > { %p22_p7 = scmp.ge.s32.totalorder %s25_s18, 6  }
 0x849   :  { %24 = sbr.rel (!%p22_p7) target bundleno = 1 (0x1), region = 120 }

</bundles_post_ra>
